<compile_context>
chip_gen: v7x
topology: tpu7x:2x2x1
jax: 0.10.0
libtpu: 0.0.40
codegen_flags: <defaults>
</compile_context>

<pallas_src>
import math
import functools

import jax
import jax.numpy as jnp
from jax import lax
from jax.experimental import pallas as pl
from jax.experimental.pallas import tpu as pltpu

# Plain Python float (NOT a jnp array): a jnp scalar defined at module scope becomes
# a captured constant inside the Pallas kernel and fails tracing.
NEG_INF = -1e30


# ---------------------------------------------------------------------------
# Hardware query (robust fallback: assume v7x per-TC 64 MiB)
# ---------------------------------------------------------------------------
def _vmem_capacity_bytes():
    try:
        info = pltpu.get_tpu_info()
        for attr in ("vmem_capacity_bytes", "vmem_bytes"):
            cap = getattr(info, attr, None)
            if cap:
                return int(cap)
    except Exception:
        pass
    return 64 << 20


# ---------------------------------------------------------------------------
# Pallas kernel: TB batch elements per grid step.
# ---------------------------------------------------------------------------
def _make_kernel(TB, Q, K, Kp, E, H, has_kpm, use_residual, need_weights):
    D = E // H
    inv_H = 1.0 / H

    def kernel(*refs):
        it = iter(refs)
        key_ref = next(it)                               # [TB, Kp, E] keys (zero-padded to Kp)
        q_ref = next(it)                                 # [TB, Q, E]  last Q (unpadded) key rows
        kpm_ref = next(it) if has_kpm else None          # [TB, H, Kp] int8 (1 = masked)
        wq_ref = next(it)                                # [E, E]  bf16 (1/sqrt(D) folded in)
        bq_ref = next(it)                                # [1, E]  f32  (scaled)
        wkv_ref = next(it)                               # [E, 2E] bf16
        bkv_ref = next(it)                               # [1, 2E] f32
        wo_ref = next(it)                                # [E, E]  bf16
        bo_ref = next(it)                                # [1, E]  f32
        out_ref = next(it)                               # [TB, Q, E]
        attnw_ref = next(it) if need_weights else None   # [TB, Q, Kp] f32

        # ---- projections: one tall K/V matmul over all padded key rows, and a
        # ---- Q matmul over only the Q query rows. bf16 operands, f32 accumulate,
        # ---- re-cast to bf16 right after the bias add to halve VMEM/vreg traffic.
        k_bf = key_ref[...].astype(jnp.bfloat16).reshape(TB * Kp, E)
        kv = jnp.dot(k_bf, wkv_ref[...], preferred_element_type=jnp.float32)
        kv = (kv + bkv_ref[...]).astype(jnp.bfloat16).reshape(TB, Kp, 2 * E)

        q_bf = q_ref[...].astype(jnp.bfloat16).reshape(TB * Q, E)
        qp = jnp.dot(q_bf, wq_ref[...], preferred_element_type=jnp.float32)
        qp = (qp + bq_ref[...]).astype(jnp.bfloat16).reshape(TB, Q, E)

        # ---- causal / diagonal mask built in-kernel (no HBM mask stream).
        # Query row qi sits at (unpadded) key position K - Q + qi; padded key
        # positions (>= K) are masked by the causal term automatically.
        kpos = lax.broadcasted_iota(jnp.int32, (Q, Kp), 1)
        dpos = lax.broadcasted_iota(jnp.int32, (Q, Kp), 0) + (K - Q)
        causal = (kpos > dpos)[None]                      # [1, Q, Kp]
        if has_kpm:
            not_diag = (kpos != dpos)[None]               # [1, Q, Kp]
            kpm_all = kpm_ref[...].astype(jnp.int32) != 0  # [TB, H, Kp] bool

        if need_weights:
            attnw_ref[...] = jnp.zeros((TB, Q, Kp), jnp.float32)

        # ---- per-head attention -------------------------------------------------
        # TODO(synk): D-wide lane slices (D % 128 != 0) cost a relayout per head and
        # the D-deep score contraction uses only ~D/256 of the MXU; a head-major /
        # lane-padded weight layout would remove both at the cost of padded FLOPs.
        heads = []
        for h in range(H):
            qh = qp[:, :, h * D:(h + 1) * D]              # [TB, Q, D]  bf16
            kh = kv[:, :, h * D:(h + 1) * D]              # [TB, Kp, D] bf16
            vh = kv[:, :, E + h * D:E + (h + 1) * D]      # [TB, Kp, D] bf16

            scores = jnp.einsum('bqd,bkd->bqk', qh, kh,
                                preferred_element_type=jnp.float32)   # [TB,Q,Kp] f32
            if has_kpm:
                masked = causal | (kpm_all[:, h, :][:, None, :] & not_diag)
            else:
                masked = causal
            scores = jnp.where(masked, NEG_INF, scores)

            # softmax in f32 (approx reciprocal runs on the EUP slot; rows sum to 1
            # only to ~1e-3, which the returned averaged weights inherit).
            m = jnp.max(scores, axis=-1, keepdims=True)
            p = jnp.exp(scores - m)
            denom = jnp.sum(p, axis=-1, keepdims=True)
            probs = p * pl.reciprocal(denom, approx=True)

            attn_h = jnp.einsum('bqk,bkd->bqd', probs.astype(jnp.bfloat16), vh,
                                preferred_element_type=jnp.float32)   # [TB,Q,D] f32
            heads.append(attn_h)
            if need_weights:
                # accumulate into the VMEM output block instead of a vreg
                # accumulator so the unrolled head loop doesn't pin a live range.
                attnw_ref[...] += probs * inv_H

        # ---- single full-E output projection + residual -------------------------
        attn = jnp.concatenate(heads, axis=-1).astype(jnp.bfloat16).reshape(TB * Q, E)
        out = jnp.dot(attn, wo_ref[...], preferred_element_type=jnp.float32)
        out = (out + bo_ref[...]).reshape(TB, Q, E)
        if use_residual:
            out = out + q_ref[...].astype(jnp.float32)    # re-load residual at the end
        out_ref[...] = out.astype(out_ref.dtype)

    return kernel


# ---------------------------------------------------------------------------
# Tiling / VMEM heuristics (generation-aware via queried VMEM capacity)
# ---------------------------------------------------------------------------
def _pick_tb(B, Kp, Q, E, H, itemsize, has_kpm, need_weights, vmem_cap):
    per_b = (2 * Kp * E * itemsize              # key block (double buffered)
             + 2 * Q * E * itemsize             # query block
             + (2 * H * Kp if has_kpm else 0)   # int8 padding rows
             + 2 * Q * E * itemsize             # output block
             + (2 * Q * Kp * 4 if need_weights else 0)
             + Kp * 2 * E * 2 + Q * E * 2       # bf16 kv / q projections
             + 4 * Q * Kp * 4                   # score / softmax temporaries
             + 3 * Q * E * 4)                   # head outputs + out-proj temp
    budget = max(vmem_cap // 4, 8 << 20)
    tb = max(1, min(B, budget // max(per_b, 1)))
    # keep >= min(B, 4) grid steps: 2 per TensorCore on v7x megacore, and at least
    # 2 steps elsewhere so the key-block DMA overlaps compute.
    tb = min(tb, max(1, B // min(B, 4)))
    while B % tb:
        tb -= 1
    return max(tb, 1)


def _vmem_limit_bytes(TB, Kp, Q, E, H, itemsize, has_kpm, need_weights, vmem_cap):
    weights = 2 * (4 * E * E * 2 + 4 * E * 4)   # double-buffered bf16 W + f32 biases
    blocks = 2 * TB * (Kp * E + 2 * Q * E) * itemsize
    if has_kpm:
        blocks += 2 * TB * H * Kp
    if need_weights:
        blocks += 2 * TB * Q * Kp * 4
    temps = TB * (Kp * 2 * E * 2 + Q * E * 2 + 6 * Q * Kp * 4 + 4 * Q * E * 4)
    total = weights + blocks + temps + (4 << 20)
    cap = (vmem_cap * 3) // 4                   # headroom for Mosaic internal scratch
    return int(min(max(total, 32 << 20), cap))


# ---------------------------------------------------------------------------
# Wrapper
# ---------------------------------------------------------------------------
@functools.partial(jax.jit, static_argnames=("query_length", "num_heads",
                                             "use_residual", "need_weights"))
def episode_mha_block(key, query_length, params, num_heads,
                      key_padding_mask=None, use_residual=True, need_weights=True):
    B, K, E = key.shape
    Q = int(query_length)
    H = int(num_heads)
    assert E % H == 0 and 1 <= Q <= K
    D = E // H

    wq, wk, wv, wo, bq, bk, bv, bo = params
    scale = 1.0 / math.sqrt(D)
    # Host-side weight prep: transpose to [in, out], cast to bf16, fold 1/sqrt(D)
    # into Wq / bq, fuse the K and V projections.
    wq_t = (wq * scale).T.astype(jnp.bfloat16)                          # [E, E]
    bq_s = (bq * scale).astype(jnp.float32)                             # [1, E]
    wkv_t = jnp.concatenate([wk, wv], axis=0).T.astype(jnp.bfloat16)    # [E, 2E]
    bkv = jnp.concatenate([bk, bv], axis=1).astype(jnp.float32)         # [1, 2E]
    wo_t = wo.T.astype(jnp.bfloat16)                                    # [E, E]
    bo_f = bo.astype(jnp.float32)                                       # [1, E]

    # Pad the key axis to a lane-dense multiple of 128 (padded positions are masked
    # by the causal term; weights for them are ~0 and sliced off below).
    Kp = ((K + 127) // 128) * 128
    key_p = key if Kp == K else jnp.pad(key, ((0, 0), (0, Kp - K), (0, 0)))
    query = key[:, K - Q:, :]                                           # [B, Q, E]

    has_kpm = key_padding_mask is not None
    if has_kpm:
        P = key_padding_mask.shape[1]
        assert P <= K
        kpm = key_padding_mask.astype(bool)
        kpm_full = jnp.concatenate(
            [jnp.repeat(kpm[:, :1], K - P, axis=1), kpm], axis=1)       # [B, K]
        # torch .repeat() quirk: attention row i = (b*H + h) uses padding row i % B.
        row_batch = (jnp.arange(B)[:, None] * H + jnp.arange(H)[None, :]) % B
        kpm_bh = kpm_full[row_batch].astype(jnp.int8)                   # [B, H, K]
        if Kp != K:
            kpm_bh = jnp.pad(kpm_bh, ((0, 0), (0, 0), (0, Kp - K)))

    itemsize = jnp.dtype(key.dtype).itemsize
    vmem_cap = _vmem_capacity_bytes()
    TB = _pick_tb(B, Kp, Q, E, H, itemsize, has_kpm, need_weights, vmem_cap)
    grid = (B // TB,)

    kernel = _make_kernel(TB, Q, K, Kp, E, H, has_kpm, use_residual, need_weights)

    def _wspec(shape):
        return pl.BlockSpec(shape, lambda b: (0,) * len(shape))

    in_specs = [pl.BlockSpec((TB, Kp, E), lambda b: (b, 0, 0)),
                pl.BlockSpec((TB, Q, E), lambda b: (b, 0, 0))]
    inputs = [key_p, query]
    if has_kpm:
        in_specs.append(pl.BlockSpec((TB, H, Kp), lambda b: (b, 0, 0)))
        inputs.append(kpm_bh)
    in_specs += [_wspec((E, E)), _wspec((1, E)),
                 _wspec((E, 2 * E)), _wspec((1, 2 * E)),
                 _wspec((E, E)), _wspec((1, E))]
    inputs += [wq_t, bq_s, wkv_t, bkv, wo_t, bo_f]

    out_shape = [jax.ShapeDtypeStruct((B, Q, E), key.dtype)]
    out_specs = [pl.BlockSpec((TB, Q, E), lambda b: (b, 0, 0))]
    if need_weights:
        out_shape.append(jax.ShapeDtypeStruct((B, Q, Kp), jnp.float32))
        out_specs.append(pl.BlockSpec((TB, Q, Kp), lambda b: (b, 0, 0)))

    result = pl.pallas_call(
        kernel,
        out_shape=tuple(out_shape),
        grid=grid,
        in_specs=in_specs,
        out_specs=tuple(out_specs),
        compiler_params=pltpu.CompilerParams(
            dimension_semantics=("parallel",),
            vmem_limit_bytes=_vmem_limit_bytes(TB, Kp, Q, E, H, itemsize,
                                               has_kpm, need_weights, vmem_cap)),
    )(*inputs)

    if need_weights:
        return result[0], result[1][:, :, :K]
    return result[0], None


# ---------------------------------------------------------------------------
# Pure-JAX f32 reference (module semantics, for correctness checking)
# ---------------------------------------------------------------------------
def build_bool_mask(B, K, Q, H, key_padding_mask=None):
    causal = jnp.triu(jnp.ones((K, K), dtype=bool), k=1)[-Q:]            # [Q, K]
    if key_padding_mask is None:
        return jnp.broadcast_to(causal[None, None], (B, H, Q, K))
    P = key_padding_mask.shape[1]
    assert P <= K
    kpm = jnp.concatenate(
        [jnp.repeat(key_padding_mask[:, :1], K - P, axis=1), key_padding_mask],
        axis=1)                                                           # [B, K]
    row_batch = jnp.arange(B * H) % B
    kpm_rows = kpm[row_batch]                                             # [B*H, K]
    mask3 = jnp.logical_or(causal[None], kpm_rows[:, None, :])            # [B*H, Q, K]
    eye = (~jnp.eye(K, dtype=bool))[-Q:]
    mask3 = jnp.logical_and(mask3, eye[None])
    return mask3.reshape(B, H, Q, K)


def reference_forward(key, Q, H, params, key_padding_mask=None, use_residual=True):
    B, K, E = key.shape
    D = E // H
    wq, wk, wv, wo, bq, bk, bv, bo = params
    q_in = key[:, K - Q:]
    qp = jnp.einsum("bqe,fe->bqf", q_in, wq) + bq
    kp = jnp.einsum("bke,fe->bkf", key, wk) + bk
    vp = jnp.einsum("bke,fe->bkf", key, wv) + bv
    qh = qp.reshape(B, Q, H, D).transpose(0, 2, 1, 3)
    kh = kp.reshape(B, K, H, D).transpose(0, 2, 1, 3)
    vh = vp.reshape(B, K, H, D).transpose(0, 2, 1, 3)
    scores = jnp.einsum("bhqd,bhkd->bhqk", qh, kh) / math.sqrt(D)
    mask = build_bool_mask(B, K, Q, H, key_padding_mask)
    scores = jnp.where(mask, NEG_INF, scores)
    probs = jax.nn.softmax(scores, axis=-1)
    attn = jnp.einsum("bhqk,bhkd->bhqd", probs, vh)
    attn = attn.transpose(0, 2, 1, 3).reshape(B, Q, E)
    out = jnp.einsum("bqe,fe->bqf", attn, wo) + bo
    if use_residual:
        out = out + q_in
    return out, probs.mean(axis=1)


if __name__ == "__main__":
    B, K, E, H, Q = 2, 16, 32, 4, 8

    root = jax.random.PRNGKey(0)
    ks = jax.random.split(root, 10)
    lim = 1.0 / math.sqrt(E)
    u = lambda k, shape: jax.random.uniform(k, shape, jnp.float32, -lim, lim)

    # nn.MultiheadAttention params: in_proj split into q/k/v + out_proj, all biased.
    params = (
        u(ks[0], (E, E)), u(ks[1], (E, E)), u(ks[2], (E, E)), u(ks[3], (E, E)),  # Wq Wk Wv Wo
        u(ks[4], (1, E)), u(ks[5], (1, E)), u(ks[6], (1, E)), u(ks[7], (1, E)),  # bq bk bv bo
    )

    x = jax.random.normal(ks[8], (B, K, E), jnp.float32)
    key_padding_mask = jax.random.bernoulli(ks[9], 0.3, (B, 10))   # shorter than K

    # With padding mask (exercises the pad-concat and the torch .repeat() quirk).
    out, w = episode_mha_block(x, Q, params, H, key_padding_mask=key_padding_mask,
                               use_residual=True, need_weights=True)
    jax.block_until_ready((out, w))
    ref_out, ref_w = reference_forward(x, Q, H, params,
                                       key_padding_mask=key_padding_mask,
                                       use_residual=True)
    assert out.shape == (B, Q, E) and w.shape == (B, Q, K)
    # Tolerances account for bf16 MXU operands and the approximate reciprocal.
    assert jnp.allclose(out, ref_out, atol=1e-1, rtol=1e-1), "output mismatch (masked)"
    assert jnp.allclose(w, ref_w, atol=5e-2, rtol=5e-2), "attn weights mismatch (masked)"

    # Causal-only case (no padding-mask input is shipped at all).
    out2, w2 = episode_mha_block(x, Q, params, H, key_padding_mask=None,
                                 use_residual=True, need_weights=True)
    jax.block_until_ready((out2, w2))
    ref_out2, ref_w2 = reference_forward(x, Q, H, params, key_padding_mask=None,
                                         use_residual=True)
    assert jnp.allclose(out2, ref_out2, atol=1e-1, rtol=1e-1), "output mismatch (no-mask)"
    assert jnp.allclose(w2, ref_w2, atol=5e-2, rtol=5e-2), "attn weights mismatch (no-mask)"

    print("KERNEL_OK")
</pallas_src>

<mosaic_0001>
module attributes {stable_mosaic.version = 11 : i64} {
  func.func @kernel(%arg0: i32, %arg1: memref<1x128x32xf32, #tpu.memory_space<vmem>>, %arg2: memref<1x8x32xf32, #tpu.memory_space<vmem>>, %arg3: memref<1x4x128xi8, #tpu.memory_space<vmem>>, %arg4: memref<32x32xbf16, #tpu.memory_space<vmem>>, %arg5: memref<1x32xf32, #tpu.memory_space<vmem>>, %arg6: memref<32x64xbf16, #tpu.memory_space<vmem>>, %arg7: memref<1x64xf32, #tpu.memory_space<vmem>>, %arg8: memref<32x32xbf16, #tpu.memory_space<vmem>>, %arg9: memref<1x32xf32, #tpu.memory_space<vmem>>, %arg10: memref<1x8x32xf32, #tpu.memory_space<vmem>>, %arg11: memref<1x8x128xf32, #tpu.memory_space<vmem>>) attributes {dimension_semantics = [#tpu.dimension_semantics<parallel>], iteration_bounds = array<i64: 2>, scalar_prefetch = 0 : i64, scratch_operands = 0 : i64, tpu.core_type = #tpu.core_type<tc>, window_params = [{transform_indices = @transform_0, window_bounds = array<i64: 1, 128, 32>}, {transform_indices = @transform_1, window_bounds = array<i64: 1, 8, 32>}, {transform_indices = @transform_2, window_bounds = array<i64: 1, 4, 128>}, {pipeline_mode = #tpu.pipeline_mode<synchronous>, transform_indices = @transform_3, window_bounds = array<i64: 32, 32>}, {pipeline_mode = #tpu.pipeline_mode<synchronous>, transform_indices = @transform_4, window_bounds = array<i64: 1, 32>}, {pipeline_mode = #tpu.pipeline_mode<synchronous>, transform_indices = @transform_5, window_bounds = array<i64: 32, 64>}, {pipeline_mode = #tpu.pipeline_mode<synchronous>, transform_indices = @transform_6, window_bounds = array<i64: 1, 64>}, {pipeline_mode = #tpu.pipeline_mode<synchronous>, transform_indices = @transform_7, window_bounds = array<i64: 32, 32>}, {pipeline_mode = #tpu.pipeline_mode<synchronous>, transform_indices = @transform_8, window_bounds = array<i64: 1, 32>}, {transform_indices = @transform_9, window_bounds = array<i64: 1, 8, 32>}, {transform_indices = @transform_10, window_bounds = array<i64: 1, 8, 128>}]} {
    %c0 = arith.constant 0 : index
    %c0_0 = arith.constant 0 : index
    %c0_1 = arith.constant 0 : index
    %0 = vector.load %arg1[%c0, %c0_0, %c0_1] : memref<1x128x32xf32, #tpu.memory_space<vmem>>, vector<1x128x32xf32>
    %1 = arith.truncf %0 : vector<1x128x32xf32> to vector<1x128x32xbf16>
    %2 = vector.shape_cast %1 : vector<1x128x32xbf16> to vector<128x32xbf16>
    %c0_2 = arith.constant 0 : index
    %c0_3 = arith.constant 0 : index
    %3 = vector.load %arg6[%c0_2, %c0_3] : memref<32x64xbf16, #tpu.memory_space<vmem>>, vector<32x64xbf16>
    %cst = arith.constant dense<0.000000e+00> : vector<128x64xf32>
    %4 = tpu.matmul %2, %3, %cst {dimension_numbers = #tpu.dot_dimension_numbers<[1], [0], [0], [1], [0, 0, 1, 1], [], []>} : vector<128x32xbf16>, vector<32x64xbf16>, vector<128x64xf32> -> vector<128x64xf32>
    %c0_4 = arith.constant 0 : index
    %c0_5 = arith.constant 0 : index
    %5 = vector.load %arg7[%c0_4, %c0_5] : memref<1x64xf32, #tpu.memory_space<vmem>>, vector<1x64xf32>
    %6 = vector.broadcast %5 : vector<1x64xf32> to vector<128x64xf32>
    %7 = arith.addf %4, %6 : vector<128x64xf32>
    %8 = arith.truncf %7 : vector<128x64xf32> to vector<128x64xbf16>
    %9 = vector.shape_cast %8 : vector<128x64xbf16> to vector<1x128x64xbf16>
    %c0_6 = arith.constant 0 : index
    %c0_7 = arith.constant 0 : index
    %c0_8 = arith.constant 0 : index
    %10 = vector.load %arg2[%c0_6, %c0_7, %c0_8] : memref<1x8x32xf32, #tpu.memory_space<vmem>>, vector<1x8x32xf32>
    %11 = arith.truncf %10 : vector<1x8x32xf32> to vector<1x8x32xbf16>
    %12 = vector.shape_cast %11 : vector<1x8x32xbf16> to vector<8x32xbf16>
    %c0_9 = arith.constant 0 : index
    %c0_10 = arith.constant 0 : index
    %13 = vector.load %arg4[%c0_9, %c0_10] : memref<32x32xbf16, #tpu.memory_space<vmem>>, vector<32x32xbf16>
    %cst_11 = arith.constant dense<0.000000e+00> : vector<8x32xf32>
    %14 = tpu.matmul %12, %13, %cst_11 {dimension_numbers = #tpu.dot_dimension_numbers<[1], [0], [0], [1], [0, 0, 1, 1], [], []>} : vector<8x32xbf16>, vector<32x32xbf16>, vector<8x32xf32> -> vector<8x32xf32>
    %c0_12 = arith.constant 0 : index
    %c0_13 = arith.constant 0 : index
    %15 = vector.load %arg5[%c0_12, %c0_13] : memref<1x32xf32, #tpu.memory_space<vmem>>, vector<1x32xf32>
    %16 = vector.broadcast %15 : vector<1x32xf32> to vector<8x32xf32>
    %17 = arith.addf %14, %16 : vector<8x32xf32>
    %18 = arith.truncf %17 : vector<8x32xf32> to vector<8x32xbf16>
    %19 = vector.shape_cast %18 : vector<8x32xbf16> to vector<1x8x32xbf16>
    %20 = tpu.iota {dimensions = array<i32: 1>} : vector<8x128xi32>
    %21 = tpu.iota {dimensions = array<i32: 0>} : vector<8x128xi32>
    %c8_i32 = arith.constant 8 : i32
    %22 = vector.broadcast %c8_i32 : i32 to vector<8x128xi32>
    %23 = arith.addi %21, %22 : vector<8x128xi32>
    %24 = arith.cmpi sgt, %20, %23 : vector<8x128xi32>
    %25 = vector.shape_cast %24 : vector<8x128xi1> to vector<1x8x128xi1>
    %26 = arith.cmpi ne, %20, %23 : vector<8x128xi32>
    %27 = vector.shape_cast %26 : vector<8x128xi1> to vector<1x8x128xi1>
    %c0_14 = arith.constant 0 : index
    %c0_15 = arith.constant 0 : index
    %c0_16 = arith.constant 0 : index
    %28 = vector.load %arg3[%c0_14, %c0_15, %c0_16] : memref<1x4x128xi8, #tpu.memory_space<vmem>>, vector<1x4x128xi8>
    %29 = arith.extsi %28 : vector<1x4x128xi8> to vector<1x4x128xi32>
    %c0_i32 = arith.constant 0 : i32
    %30 = vector.broadcast %c0_i32 : i32 to vector<1x4x128xi32>
    %31 = arith.cmpi ne, %29, %30 : vector<1x4x128xi32>
    %cst_17 = arith.constant 0.000000e+00 : f32
    %32 = vector.broadcast %cst_17 : f32 to vector<1x8x128xf32>
    %c0_18 = arith.constant 0 : index
    %c0_19 = arith.constant 0 : index
    %c0_20 = arith.constant 0 : index
    %33 = vector.load %arg11[%c0_18, %c0_19, %c0_20] : memref<1x8x128xf32, #tpu.memory_space<vmem>>, vector<1x8x128xf32>
    tpu.vector_store %arg11[%c0_18, %c0_19, %c0_20], %32 {strides = array<i32>} : memref<1x8x128xf32, #tpu.memory_space<vmem>>, vector<1x8x128xf32>,
    %34 = vector.extract_strided_slice %19 {offsets = [0, 0, 0], sizes = [1, 8, 8], strides = [1, 1, 1]} : vector<1x8x32xbf16> to vector<1x8x8xbf16>
    %35 = vector.extract_strided_slice %9 {offsets = [0, 0, 0], sizes = [1, 128, 8], strides = [1, 1, 1]} : vector<1x128x64xbf16> to vector<1x128x8xbf16>
    %36 = vector.extract_strided_slice %9 {offsets = [0, 0, 32], sizes = [1, 128, 8], strides = [1, 1, 1]} : vector<1x128x64xbf16> to vector<1x128x8xbf16>
    "tpu.trace_start"() <{level = 10 : i32, message = "bqd,bkd->bqk"}> : () -> ()
    %cst_21 = arith.constant dense<0.000000e+00> : vector<1x8x128xf32>
    %37 = tpu.matmul %34, %35, %cst_21 {dimension_numbers = #tpu.dot_dimension_numbers<[2], [2], [1], [1], [0, 0, 0, 1, 1, 1], [0], [0]>} : vector<1x8x8xbf16>, vector<1x128x8xbf16>, vector<1x8x128xf32> -> vector<1x8x128xf32>
    "tpu.trace_stop"() : () -> ()
    %38 = vector.extract_strided_slice %31 {offsets = [0, 0, 0], sizes = [1, 1, 128], strides = [1, 1, 1]} : vector<1x4x128xi1> to vector<1x1x128xi1>
    %39 = vector.shape_cast %38 : vector<1x1x128xi1> to vector<1x128xi1>
    %40 = vector.shape_cast %39 : vector<1x128xi1> to vector<1x1x128xi1>
    %41 = vector.broadcast %40 : vector<1x1x128xi1> to vector<1x8x128xi1>
    %42 = arith.andi %41, %27 : vector<1x8x128xi1>
    %43 = arith.ori %25, %42 : vector<1x8x128xi1>
    %cst_22 = arith.constant -1.000000e+30 : f32
    %44 = vector.broadcast %cst_22 : f32 to vector<1x8x128xf32>
    %45 = arith.select %43, %44, %37 : vector<1x8x128xi1>, vector<1x8x128xf32>
    %cst_23 = arith.constant dense<0xFF800000> : vector<1x8xf32>
    %46 = vector.multi_reduction <maximumf>, %45, %cst_23 [2] : vector<1x8x128xf32> to vector<1x8xf32>
    %47 = vector.shape_cast %46 : vector<1x8xf32> to vector<1x8x1xf32>
    %48 = vector.broadcast %47 : vector<1x8x1xf32> to vector<1x8x128xf32>
    %49 = arith.subf %45, %48 : vector<1x8x128xf32>
    %50 = math.exp %49 : vector<1x8x128xf32>
    %cst_24 = arith.constant dense<0.000000e+00> : vector<1x8xf32>
    %51 = vector.multi_reduction <add>, %50, %cst_24 [2] : vector<1x8x128xf32> to vector<1x8xf32>
    %52 = vector.shape_cast %51 : vector<1x8xf32> to vector<1x8x1xf32>
    %53 = tpu.reciprocal %52 {approx = true} : vector<1x8x1xf32> -> vector<1x8x1xf32>
    %54 = vector.broadcast %53 : vector<1x8x1xf32> to vector<1x8x128xf32>
    %55 = arith.mulf %50, %54 : vector<1x8x128xf32>
    %56 = arith.truncf %55 : vector<1x8x128xf32> to vector<1x8x128xbf16>
    "tpu.trace_start"() <{level = 10 : i32, message = "bqk,bkd->bqd"}> : () -> ()
    %cst_25 = arith.constant dense<0.000000e+00> : vector<1x8x8xf32>
    %57 = tpu.matmul %56, %36, %cst_25 {dimension_numbers = #tpu.dot_dimension_numbers<[2], [1], [1], [2], [0, 0, 0, 1, 1, 2], [0], [0]>} : vector<1x8x128xbf16>, vector<1x128x8xbf16>, vector<1x8x8xf32> -> vector<1x8x8xf32>
    "tpu.trace_stop"() : () -> ()
    %c0_26 = arith.constant 0 : index
    %c0_27 = arith.constant 0 : index
    %c0_28 = arith.constant 0 : index
    %58 = vector.load %arg11[%c0_26, %c0_27, %c0_28] : memref<1x8x128xf32, #tpu.memory_space<vmem>>, vector<1x8x128xf32>
    %cst_29 = arith.constant 2.500000e-01 : f32
    %59 = vector.broadcast %cst_29 : f32 to vector<1x8x128xf32>
    %60 = arith.mulf %55, %59 : vector<1x8x128xf32>
    %61 = arith.addf %58, %60 : vector<1x8x128xf32>
    %c0_30 = arith.constant 0 : index
    %c0_31 = arith.constant 0 : index
    %c0_32 = arith.constant 0 : index
    %62 = vector.load %arg11[%c0_30, %c0_31, %c0_32] : memref<1x8x128xf32, #tpu.memory_space<vmem>>, vector<1x8x128xf32>
    tpu.vector_store %arg11[%c0_30, %c0_31, %c0_32], %61 {strides = array<i32>} : memref<1x8x128xf32, #tpu.memory_space<vmem>>, vector<1x8x128xf32>,
    %63 = vector.extract_strided_slice %19 {offsets = [0, 0, 8], sizes = [1, 8, 8], strides = [1, 1, 1]} : vector<1x8x32xbf16> to vector<1x8x8xbf16>
    %64 = vector.extract_strided_slice %9 {offsets = [0, 0, 8], sizes = [1, 128, 8], strides = [1, 1, 1]} : vector<1x128x64xbf16> to vector<1x128x8xbf16>
    %65 = vector.extract_strided_slice %9 {offsets = [0, 0, 40], sizes = [1, 128, 8], strides = [1, 1, 1]} : vector<1x128x64xbf16> to vector<1x128x8xbf16>
    "tpu.trace_start"() <{level = 10 : i32, message = "bqd,bkd->bqk"}> : () -> ()
    %cst_33 = arith.constant dense<0.000000e+00> : vector<1x8x128xf32>
    %66 = tpu.matmul %63, %64, %cst_33 {dimension_numbers = #tpu.dot_dimension_numbers<[2], [2], [1], [1], [0, 0, 0, 1, 1, 1], [0], [0]>} : vector<1x8x8xbf16>, vector<1x128x8xbf16>, vector<1x8x128xf32> -> vector<1x8x128xf32>
    "tpu.trace_stop"() : () -> ()
    %67 = vector.extract_strided_slice %31 {offsets = [0, 1, 0], sizes = [1, 1, 128], strides = [1, 1, 1]} : vector<1x4x128xi1> to vector<1x1x128xi1>
    %68 = vector.shape_cast %67 : vector<1x1x128xi1> to vector<1x128xi1>
    %69 = vector.shape_cast %68 : vector<1x128xi1> to vector<1x1x128xi1>
    %70 = vector.broadcast %69 : vector<1x1x128xi1> to vector<1x8x128xi1>
    %71 = arith.andi %70, %27 : vector<1x8x128xi1>
    %72 = arith.ori %25, %71 : vector<1x8x128xi1>
    %cst_34 = arith.constant -1.000000e+30 : f32
    %73 = vector.broadcast %cst_34 : f32 to vector<1x8x128xf32>
    %74 = arith.select %72, %73, %66 : vector<1x8x128xi1>, vector<1x8x128xf32>
    %cst_35 = arith.constant dense<0xFF800000> : vector<1x8xf32>
    %75 = vector.multi_reduction <maximumf>, %74, %cst_35 [2] : vector<1x8x128xf32> to vector<1x8xf32>
    %76 = vector.shape_cast %75 : vector<1x8xf32> to vector<1x8x1xf32>
    %77 = vector.broadcast %76 : vector<1x8x1xf32> to vector<1x8x128xf32>
    %78 = arith.subf %74, %77 : vector<1x8x128xf32>
    %79 = math.exp %78 : vector<1x8x128xf32>
    %cst_36 = arith.constant dense<0.000000e+00> : vector<1x8xf32>
    %80 = vector.multi_reduction <add>, %79, %cst_36 [2] : vector<1x8x128xf32> to vector<1x8xf32>
    %81 = vector.shape_cast %80 : vector<1x8xf32> to vector<1x8x1xf32>
    %82 = tpu.reciprocal %81 {approx = true} : vector<1x8x1xf32> -> vector<1x8x1xf32>
    %83 = vector.broadcast %82 : vector<1x8x1xf32> to vector<1x8x128xf32>
    %84 = arith.mulf %79, %83 : vector<1x8x128xf32>
    %85 = arith.truncf %84 : vector<1x8x128xf32> to vector<1x8x128xbf16>
    "tpu.trace_start"() <{level = 10 : i32, message = "bqk,bkd->bqd"}> : () -> ()
    %cst_37 = arith.constant dense<0.000000e+00> : vector<1x8x8xf32>
    %86 = tpu.matmul %85, %65, %cst_37 {dimension_numbers = #tpu.dot_dimension_numbers<[2], [1], [1], [2], [0, 0, 0, 1, 1, 2], [0], [0]>} : vector<1x8x128xbf16>, vector<1x128x8xbf16>, vector<1x8x8xf32> -> vector<1x8x8xf32>
    "tpu.trace_stop"() : () -> ()
    %c0_38 = arith.constant 0 : index
    %c0_39 = arith.constant 0 : index
    %c0_40 = arith.constant 0 : index
    %87 = vector.load %arg11[%c0_38, %c0_39, %c0_40] : memref<1x8x128xf32, #tpu.memory_space<vmem>>, vector<1x8x128xf32>
    %cst_41 = arith.constant 2.500000e-01 : f32
    %88 = vector.broadcast %cst_41 : f32 to vector<1x8x128xf32>
    %89 = arith.mulf %84, %88 : vector<1x8x128xf32>
    %90 = arith.addf %87, %89 : vector<1x8x128xf32>
    %c0_42 = arith.constant 0 : index
    %c0_43 = arith.constant 0 : index
    %c0_44 = arith.constant 0 : index
    %91 = vector.load %arg11[%c0_42, %c0_43, %c0_44] : memref<1x8x128xf32, #tpu.memory_space<vmem>>, vector<1x8x128xf32>
    tpu.vector_store %arg11[%c0_42, %c0_43, %c0_44], %90 {strides = array<i32>} : memref<1x8x128xf32, #tpu.memory_space<vmem>>, vector<1x8x128xf32>,
    %92 = vector.extract_strided_slice %19 {offsets = [0, 0, 16], sizes = [1, 8, 8], strides = [1, 1, 1]} : vector<1x8x32xbf16> to vector<1x8x8xbf16>
    %93 = vector.extract_strided_slice %9 {offsets = [0, 0, 16], sizes = [1, 128, 8], strides = [1, 1, 1]} : vector<1x128x64xbf16> to vector<1x128x8xbf16>
    %94 = vector.extract_strided_slice %9 {offsets = [0, 0, 48], sizes = [1, 128, 8], strides = [1, 1, 1]} : vector<1x128x64xbf16> to vector<1x128x8xbf16>
    "tpu.trace_start"() <{level = 10 : i32, message = "bqd,bkd->bqk"}> : () -> ()
    %cst_45 = arith.constant dense<0.000000e+00> : vector<1x8x128xf32>
    %95 = tpu.matmul %92, %93, %cst_45 {dimension_numbers = #tpu.dot_dimension_numbers<[2], [2], [1], [1], [0, 0, 0, 1, 1, 1], [0], [0]>} : vector<1x8x8xbf16>, vector<1x128x8xbf16>, vector<1x8x128xf32> -> vector<1x8x128xf32>
    "tpu.trace_stop"() : () -> ()
    %96 = vector.extract_strided_slice %31 {offsets = [0, 2, 0], sizes = [1, 1, 128], strides = [1, 1, 1]} : vector<1x4x128xi1> to vector<1x1x128xi1>
    %97 = vector.shape_cast %96 : vector<1x1x128xi1> to vector<1x128xi1>
    %98 = vector.shape_cast %97 : vector<1x128xi1> to vector<1x1x128xi1>
    %99 = vector.broadcast %98 : vector<1x1x128xi1> to vector<1x8x128xi1>
    %100 = arith.andi %99, %27 : vector<1x8x128xi1>
    %101 = arith.ori %25, %100 : vector<1x8x128xi1>
    %cst_46 = arith.constant -1.000000e+30 : f32
    %102 = vector.broadcast %cst_46 : f32 to vector<1x8x128xf32>
    %103 = arith.select %101, %102, %95 : vector<1x8x128xi1>, vector<1x8x128xf32>
    %cst_47 = arith.constant dense<0xFF800000> : vector<1x8xf32>
    %104 = vector.multi_reduction <maximumf>, %103, %cst_47 [2] : vector<1x8x128xf32> to vector<1x8xf32>
    %105 = vector.shape_cast %104 : vector<1x8xf32> to vector<1x8x1xf32>
    %106 = vector.broadcast %105 : vector<1x8x1xf32> to vector<1x8x128xf32>
    %107 = arith.subf %103, %106 : vector<1x8x128xf32>
    %108 = math.exp %107 : vector<1x8x128xf32>
    %cst_48 = arith.constant dense<0.000000e+00> : vector<1x8xf32>
    %109 = vector.multi_reduction <add>, %108, %cst_48 [2] : vector<1x8x128xf32> to vector<1x8xf32>
    %110 = vector.shape_cast %109 : vector<1x8xf32> to vector<1x8x1xf32>
    %111 = tpu.reciprocal %110 {approx = true} : vector<1x8x1xf32> -> vector<1x8x1xf32>
    %112 = vector.broadcast %111 : vector<1x8x1xf32> to vector<1x8x128xf32>
    %113 = arith.mulf %108, %112 : vector<1x8x128xf32>
    %114 = arith.truncf %113 : vector<1x8x128xf32> to vector<1x8x128xbf16>
    "tpu.trace_start"() <{level = 10 : i32, message = "bqk,bkd->bqd"}> : () -> ()
    %cst_49 = arith.constant dense<0.000000e+00> : vector<1x8x8xf32>
    %115 = tpu.matmul %114, %94, %cst_49 {dimension_numbers = #tpu.dot_dimension_numbers<[2], [1], [1], [2], [0, 0, 0, 1, 1, 2], [0], [0]>} : vector<1x8x128xbf16>, vector<1x128x8xbf16>, vector<1x8x8xf32> -> vector<1x8x8xf32>
    "tpu.trace_stop"() : () -> ()
    %c0_50 = arith.constant 0 : index
    %c0_51 = arith.constant 0 : index
    %c0_52 = arith.constant 0 : index
    %116 = vector.load %arg11[%c0_50, %c0_51, %c0_52] : memref<1x8x128xf32, #tpu.memory_space<vmem>>, vector<1x8x128xf32>
    %cst_53 = arith.constant 2.500000e-01 : f32
    %117 = vector.broadcast %cst_53 : f32 to vector<1x8x128xf32>
    %118 = arith.mulf %113, %117 : vector<1x8x128xf32>
    %119 = arith.addf %116, %118 : vector<1x8x128xf32>
    %c0_54 = arith.constant 0 : index
    %c0_55 = arith.constant 0 : index
    %c0_56 = arith.constant 0 : index
    %120 = vector.load %arg11[%c0_54, %c0_55, %c0_56] : memref<1x8x128xf32, #tpu.memory_space<vmem>>, vector<1x8x128xf32>
    tpu.vector_store %arg11[%c0_54, %c0_55, %c0_56], %119 {strides = array<i32>} : memref<1x8x128xf32, #tpu.memory_space<vmem>>, vector<1x8x128xf32>,
    %121 = vector.extract_strided_slice %19 {offsets = [0, 0, 24], sizes = [1, 8, 8], strides = [1, 1, 1]} : vector<1x8x32xbf16> to vector<1x8x8xbf16>
    %122 = vector.extract_strided_slice %9 {offsets = [0, 0, 24], sizes = [1, 128, 8], strides = [1, 1, 1]} : vector<1x128x64xbf16> to vector<1x128x8xbf16>
    %123 = vector.extract_strided_slice %9 {offsets = [0, 0, 56], sizes = [1, 128, 8], strides = [1, 1, 1]} : vector<1x128x64xbf16> to vector<1x128x8xbf16>
    "tpu.trace_start"() <{level = 10 : i32, message = "bqd,bkd->bqk"}> : () -> ()
    %cst_57 = arith.constant dense<0.000000e+00> : vector<1x8x128xf32>
    %124 = tpu.matmul %121, %122, %cst_57 {dimension_numbers = #tpu.dot_dimension_numbers<[2], [2], [1], [1], [0, 0, 0, 1, 1, 1], [0], [0]>} : vector<1x8x8xbf16>, vector<1x128x8xbf16>, vector<1x8x128xf32> -> vector<1x8x128xf32>
    "tpu.trace_stop"() : () -> ()
    %125 = vector.extract_strided_slice %31 {offsets = [0, 3, 0], sizes = [1, 1, 128], strides = [1, 1, 1]} : vector<1x4x128xi1> to vector<1x1x128xi1>
    %126 = vector.shape_cast %125 : vector<1x1x128xi1> to vector<1x128xi1>
    %127 = vector.shape_cast %126 : vector<1x128xi1> to vector<1x1x128xi1>
    %128 = vector.broadcast %127 : vector<1x1x128xi1> to vector<1x8x128xi1>
    %129 = arith.andi %128, %27 : vector<1x8x128xi1>
    %130 = arith.ori %25, %129 : vector<1x8x128xi1>
    %cst_58 = arith.constant -1.000000e+30 : f32
    %131 = vector.broadcast %cst_58 : f32 to vector<1x8x128xf32>
    %132 = arith.select %130, %131, %124 : vector<1x8x128xi1>, vector<1x8x128xf32>
    %cst_59 = arith.constant dense<0xFF800000> : vector<1x8xf32>
    %133 = vector.multi_reduction <maximumf>, %132, %cst_59 [2] : vector<1x8x128xf32> to vector<1x8xf32>
    %134 = vector.shape_cast %133 : vector<1x8xf32> to vector<1x8x1xf32>
    %135 = vector.broadcast %134 : vector<1x8x1xf32> to vector<1x8x128xf32>
    %136 = arith.subf %132, %135 : vector<1x8x128xf32>
    %137 = math.exp %136 : vector<1x8x128xf32>
    %cst_60 = arith.constant dense<0.000000e+00> : vector<1x8xf32>
    %138 = vector.multi_reduction <add>, %137, %cst_60 [2] : vector<1x8x128xf32> to vector<1x8xf32>
    %139 = vector.shape_cast %138 : vector<1x8xf32> to vector<1x8x1xf32>
    %140 = tpu.reciprocal %139 {approx = true} : vector<1x8x1xf32> -> vector<1x8x1xf32>
    %141 = vector.broadcast %140 : vector<1x8x1xf32> to vector<1x8x128xf32>
    %142 = arith.mulf %137, %141 : vector<1x8x128xf32>
    %143 = arith.truncf %142 : vector<1x8x128xf32> to vector<1x8x128xbf16>
    "tpu.trace_start"() <{level = 10 : i32, message = "bqk,bkd->bqd"}> : () -> ()
    %cst_61 = arith.constant dense<0.000000e+00> : vector<1x8x8xf32>
    %144 = tpu.matmul %143, %123, %cst_61 {dimension_numbers = #tpu.dot_dimension_numbers<[2], [1], [1], [2], [0, 0, 0, 1, 1, 2], [0], [0]>} : vector<1x8x128xbf16>, vector<1x128x8xbf16>, vector<1x8x8xf32> -> vector<1x8x8xf32>
    "tpu.trace_stop"() : () -> ()
    %c0_62 = arith.constant 0 : index
    %c0_63 = arith.constant 0 : index
    %c0_64 = arith.constant 0 : index
    %145 = vector.load %arg11[%c0_62, %c0_63, %c0_64] : memref<1x8x128xf32, #tpu.memory_space<vmem>>, vector<1x8x128xf32>
    %cst_65 = arith.constant 2.500000e-01 : f32
    %146 = vector.broadcast %cst_65 : f32 to vector<1x8x128xf32>
    %147 = arith.mulf %142, %146 : vector<1x8x128xf32>
    %148 = arith.addf %145, %147 : vector<1x8x128xf32>
    %c0_66 = arith.constant 0 : index
    %c0_67 = arith.constant 0 : index
    %c0_68 = arith.constant 0 : index
    %149 = vector.load %arg11[%c0_66, %c0_67, %c0_68] : memref<1x8x128xf32, #tpu.memory_space<vmem>>, vector<1x8x128xf32>
    tpu.vector_store %arg11[%c0_66, %c0_67, %c0_68], %148 {strides = array<i32>} : memref<1x8x128xf32, #tpu.memory_space<vmem>>, vector<1x8x128xf32>,
    %150 = tpu.concatenate %57, %86, %115, %144 in 2 : vector<1x8x8xf32>, vector<1x8x8xf32>, vector<1x8x8xf32>, vector<1x8x8xf32> -> vector<1x8x32xf32>
    %151 = arith.truncf %150 : vector<1x8x32xf32> to vector<1x8x32xbf16>
    %152 = vector.shape_cast %151 : vector<1x8x32xbf16> to vector<8x32xbf16>
    %c0_69 = arith.constant 0 : index
    %c0_70 = arith.constant 0 : index
    %153 = vector.load %arg8[%c0_69, %c0_70] : memref<32x32xbf16, #tpu.memory_space<vmem>>, vector<32x32xbf16>
    %cst_71 = arith.constant dense<0.000000e+00> : vector<8x32xf32>
    %154 = tpu.matmul %152, %153, %cst_71 {dimension_numbers = #tpu.dot_dimension_numbers<[1], [0], [0], [1], [0, 0, 1, 1], [], []>} : vector<8x32xbf16>, vector<32x32xbf16>, vector<8x32xf32> -> vector<8x32xf32>
    %c0_72 = arith.constant 0 : index
    %c0_73 = arith.constant 0 : index
    %155 = vector.load %arg9[%c0_72, %c0_73] : memref<1x32xf32, #tpu.memory_space<vmem>>, vector<1x32xf32>
    %156 = vector.broadcast %155 : vector<1x32xf32> to vector<8x32xf32>
    %157 = arith.addf %154, %156 : vector<8x32xf32>
    %158 = vector.shape_cast %157 : vector<8x32xf32> to vector<1x8x32xf32>
    %c0_74 = arith.constant 0 : index
    %c0_75 = arith.constant 0 : index
    %c0_76 = arith.constant 0 : index
    %159 = vector.load %arg2[%c0_74, %c0_75, %c0_76] : memref<1x8x32xf32, #tpu.memory_space<vmem>>, vector<1x8x32xf32>
    %160 = arith.addf %158, %159 : vector<1x8x32xf32>
    %c0_77 = arith.constant 0 : index
    %c0_78 = arith.constant 0 : index
    %c0_79 = arith.constant 0 : index
    %161 = vector.load %arg10[%c0_77, %c0_78, %c0_79] : memref<1x8x32xf32, #tpu.memory_space<vmem>>, vector<1x8x32xf32>
    tpu.vector_store %arg10[%c0_77, %c0_78, %c0_79], %160 {strides = array<i32>} : memref<1x8x32xf32, #tpu.memory_space<vmem>>, vector<1x8x32xf32>,
    return
  }
  func.func @transform_0(%arg0: i32) -> (i32, i32, i32) {
    %c0_i32 = arith.constant 0 : i32
    %c0_i32_0 = arith.constant 0 : i32
    %c0_i32_1 = arith.constant 0 : i32
    return %arg0, %c0_i32, %c0_i32_0 : i32, i32, i32
  }
  func.func @transform_1(%arg0: i32) -> (i32, i32, i32) {
    %c0_i32 = arith.constant 0 : i32
    %c0_i32_0 = arith.constant 0 : i32
    %c0_i32_1 = arith.constant 0 : i32
    return %arg0, %c0_i32, %c0_i32_0 : i32, i32, i32
  }
  func.func @transform_2(%arg0: i32) -> (i32, i32, i32) {
    %c0_i32 = arith.constant 0 : i32
    %c0_i32_0 = arith.constant 0 : i32
    %c0_i32_1 = arith.constant 0 : i32
    return %arg0, %c0_i32, %c0_i32_0 : i32, i32, i32
  }
  func.func @transform_3(%arg0: i32) -> (i32, i32) {
    %c0_i32 = arith.constant 0 : i32
    %c0_i32_0 = arith.constant 0 : i32
    %c0_i32_1 = arith.constant 0 : i32
    return %c0_i32, %c0_i32_0 : i32, i32
  }
  func.func @transform_4(%arg0: i32) -> (i32, i32) {
    %c0_i32 = arith.constant 0 : i32
    %c0_i32_0 = arith.constant 0 : i32
    %c0_i32_1 = arith.constant 0 : i32
    return %c0_i32, %c0_i32_0 : i32, i32
  }
  func.func @transform_5(%arg0: i32) -> (i32, i32) {
    %c0_i32 = arith.constant 0 : i32
    %c0_i32_0 = arith.constant 0 : i32
    %c0_i32_1 = arith.constant 0 : i32
    return %c0_i32, %c0_i32_0 : i32, i32
  }
  func.func @transform_6(%arg0: i32) -> (i32, i32) {
    %c0_i32 = arith.constant 0 : i32
    %c0_i32_0 = arith.constant 0 : i32
    %c0_i32_1 = arith.constant 0 : i32
    return %c0_i32, %c0_i32_0 : i32, i32
  }
  func.func @transform_7(%arg0: i32) -> (i32, i32) {
    %c0_i32 = arith.constant 0 : i32
    %c0_i32_0 = arith.constant 0 : i32
    %c0_i32_1 = arith.constant 0 : i32
    return %c0_i32, %c0_i32_0 : i32, i32
  }
  func.func @transform_8(%arg0: i32) -> (i32, i32) {
    %c0_i32 = arith.constant 0 : i32
    %c0_i32_0 = arith.constant 0 : i32
    %c0_i32_1 = arith.constant 0 : i32
    return %c0_i32, %c0_i32_0 : i32, i32
  }
  func.func @transform_9(%arg0: i32) -> (i32, i32, i32) {
    %c0_i32 = arith.constant 0 : i32
    %c0_i32_0 = arith.constant 0 : i32
    %c0_i32_1 = arith.constant 0 : i32
    return %arg0, %c0_i32, %c0_i32_0 : i32, i32, i32
  }
  func.func @transform_10(%arg0: i32) -> (i32, i32, i32) {
    %c0_i32 = arith.constant 0 : i32
    %c0_i32_0 = arith.constant 0 : i32
    %c0_i32_1 = arith.constant 0 : i32
    return %arg0, %c0_i32, %c0_i32_0 : i32, i32, i32
  }
}

</mosaic_0001>

<bundles_post_ra>
// kernel: episode_mha_block.1
= control target key start
LH: loop header
LB: loop body
LE: loop exit
PB: predicated region body
PF: predicated region fallthrough
CT: control target
= control target key end

     0   :  { %s3034_s0 = inlined_call_operand.vmem [shape: f32[2,128,32], index: 0, kind: input, shape index: {}]   ;;  %s3035_s1 = inlined_call_operand.vmem [shape: f32[2,8,32], index: 1, kind: input, shape index: {}]   ;;  %s3036_s2 = inlined_call_operand.vmem [shape: s8[2,4,128], index: 2, kind: input, shape index: {}]   ;;  %s3037_s3 = inlined_call_operand.vmem [shape: bf16[32,32], index: 3, kind: input, shape index: {}]   ;;  %s3038_s4 = inlined_call_operand.vmem [shape: f32[1,32], index: 4, kind: input, shape index: {}]   ;;  %s3039_s5 = inlined_call_operand.vmem [shape: bf16[32,64], index: 5, kind: input, shape index: {}]   ;;  %s3040_s6 = inlined_call_operand.vmem [shape: f32[1,64], index: 6, kind: input, shape index: {}]   ;;  %s3041_s7 = inlined_call_operand.vmem [shape: bf16[32,32], index: 7, kind: input, shape index: {}]   ;;  %s3042_s8 = inlined_call_operand.vmem [shape: f32[1,32], index: 8, kind: input, shape index: {}]   ;;  %s3043_s9 = inlined_call_operand.hbm [shape: f32[2,8,32], index: 9, kind: output, shape index: {0}]   ;;  %s3044_s10 = inlined_call_operand.hbm [shape: f32[2,8,128], index: 10, kind: output, shape index: {1}]  }
   0x1   :  { %3047 = sst [smem:[#allocation8_spill]] %s3034_s0 }
   0x2   :  { %3048 = sst [smem:[#allocation9_spill]] %s3035_s1 }
   0x3   :  { %16 = vsyncpa [#allocation3], 0 }
   0x4   :  { %18 = vsyncpa [#allocation3 + $0x1], 0 }
   0x5   :  { %19 = vsyncpa [#allocation5], 0 }
   0x6   :  { %21 = vsyncpa [#allocation5 + $0x1], 0  ;;  %s2334_s13 = smov 0   ;;  %s2336_s14 = smov 0  }
   0x7   :  { %s2338_s15 = smov 0   ;;  %s2340_s16 = smov 0  }
   0x8 LB: > { %s2355_s17 = sadd.s32 4294967295, %s2262_s16   ;;  %s1766_s18 = sadd.s32 4294967294, %s2262_s16   ;;  %s2262_s16 = sphi %s2340_s16, %s3062_s16   ;;  %s2258_s15 = sphi %s2338_s15, %s3061_s15   ;;  %s2254_s14 = sphi %s2336_s14, %s3060_s14   ;;  %s2250_s13 = sphi %s2334_s13, %s3059_s13  }
   0x9   : > { %s2359_s19 = sadd.s32 1, %s2262_s16   ;;  %s238_s20 = sadd.s32 1, %s2258_s15 }
   0xa   : > { %s235_s21 = ssub.s32 %s2262_s16, %s2359_s19  ;;  %p248_p0 = scmp.ne.s32.totalorder %s2258_s15, %s2254_s14 }
   0xb   : > { %p236_p1 = scmp.eq.s32.totalorder %s235_s21, 0  ;;  %p249_p2 = scmp.eq.s32.totalorder %s2355_s17, 1 }
   0xc   : > { %p254_p3 = scmp.ne.s32.totalorder %s2254_s14, %s2250_s13  ;;  %p255_p4 = scmp.eq.s32.totalorder %s1766_s18, 1 }
   0xd   : > { %s2370_s22 = scalar_select %p236_p1, %s2258_s15, %s238_s20  }
   0xe   : > { %p2372_p5 = por %p249_p2, %p248_p0  ;;  %p2376_p6 = por %p255_p4, %p254_p3 }
   0xf   : > { %p1769_p7 = scmp.ge.s32.totalorder %s2262_s16, 1  ;;  %p338_p8 = scmp.lt.s32.totalorder %s2262_s16, 3 }
  0x11   : > { %p339_p9 = pnand %p1769_p7, %p338_p8 }
  0x12   : > { %v2146_v0 = vld [vmem:[%s3039_s5] sm:$0xff] (!%p339_p9)   ;;  %p388_p10 = scmp.lt.s32.totalorder (!%p339_p9), %s2355_s17, 1  ;;  %v2147_v1 = vld [vmem:[%s3039_s5 + $0x8] sm:$0xff] (!%p339_p9)   ;;  %v2264_v2 = vmov (!%p339_p9), 0.0   ;;  %vm2265_vm0 = vmmov (!%p339_p9), 0   ;;  %s3051_s0 = sld [smem:[#allocation8_spill]] (!%p339_p9) }
  0x13   : > { %342 = sbr.rel (%p339_p9) target bundleno = 3178 (0xc6a), region = 56  ;;  %1893 = vmatprep.subr.bf16.mxu0 (!%p339_p9), %v2146_v0  ;;  %1913 = vmatprep.subr.bf16.mxu1 (!%p339_p9), %v2264_v2  ;;  %v2148_v3 = vld [vmem:[%s3037_s3] sm:$0xff] (!%p339_p9)   ;;  %v2149_v4 = vld [vmem:[%s3037_s3 + $0x8] sm:$0xff] (!%p339_p9)   ;;  %vm448_vm1 = vcmask (!%p339_p9), 261120   ;;  %s3052_s1 = sld [smem:[#allocation9_spill]] (!%p339_p9)  ;;  %vm658_vm2 = vcmask (!%p339_p9), 64512  }
  0x14   : > { %1894 = vmatpush3.bf16.msra.mxu0 (!%p339_p9), %v2146_v0  ;;  %1917 = vmatprep.mubr.msk.bf16.mxu1 (!%p339_p9), %vm2265_vm0, %v2264_v2  ;;  %v1775_v32 = vld [vmem:[%s3040_s6] ss:$0 sm:$0xff] (!%p339_p9)  ;;  %s2266_s20 = smov (!%p339_p9), 96   ;;  %vm792_vm13 = vcmask (!%p339_p9), 1041409   ;;  %s2269_s30 = smov (!%p339_p9), 88  }
  0x15   : > { %1895 = vmatprep.subr.bf16.mxu0 (!%p339_p9), %v2147_v1  ;;  %1914 = vmatpush3.bf16.msra.mxu1 (!%p339_p9), %v2148_v3  ;;  %s2271_s18 = smov (!%p339_p9), 80   ;;  %s2274_s25 = smov (!%p339_p9), 8  }
  0x16   : > { %1915 = vmatprep.subr.bf16.mxu1 (!%p339_p9), %v2264_v2  ;;  %s2275_s26 = smov (!%p339_p9), 16  }
  0x18   : > { %1896 = vmatpush3.bf16.msra.mxu0 (!%p339_p9), %v2147_v1 }
  0x19   : > { %1921 = vmatprep.subr.bf16.mxu0 (!%p339_p9), %v2264_v2  ;;  %1916 = vmatpush3.bf16.msra.mxu1 (!%p339_p9), %v2149_v4 }
  0x1a   : > { %s2390_s29 = scalar_select %p388_p10, %s2355_s17, 1  ;;  %1941 = vmatprep.subr.bf16.mxu1 %v2264_v2 }
  0x1c   : > { %s1804_s12 = sshll.u32 %s2390_s29, 7  ;;  %s1774_s21 = sshll.u32 %s2390_s29, 3 }
  0x1d   : > { %s2406_s27 = scalar_lea.vmem %s3051_s0, %s1804_s12  ;;  %s2418_s11 = scalar_lea.vmem %s3052_s1, %s1774_s21 }
  0x1e   : > { %v401_v5 = vld [vmem:[%s2406_s27] sm:$0xff]  ;;  %v402_v6 = vld [vmem:[%s2406_s27 + $0x8] sm:$0xff]  ;;  %v403_v7 = vld [vmem:[%s2406_s27 + $0x10] sm:$0xff]  ;;  %s399_s28 = scalar_lea.vmem %s3036_s2, %s2390_s29  ;;  %s2268_s29 = smov 120  }
  0x1f   : > { %v417_v8 = vpack.c.bf16 %v402_v6, %v401_v5  ;;  %v404_v9 = vld [vmem:[%s2406_s27 + $0x18] sm:$0xff]  ;;  %v405_v10 = vld [vmem:[%s2406_s27 + $0x20] sm:$0xff]  ;;  %v406_v11 = vld [vmem:[%s2406_s27 + $0x28] sm:$0xff]  ;;  %s2270_s12 = smov 112   ;;  %s2273_s21 = smov 72  }
  0x20   : > { %v418_v12 = vpack.c.bf16 %v404_v9, %v403_v7  ;;  %v419_v13 = vpack.c.bf16 %v406_v11, %v405_v10  ;;  %v407_v14 = vld [vmem:[%s2406_s27 + $0x30] sm:$0xff]  ;;  %v408_v15 = vld [vmem:[%s2406_s27 + $0x38] sm:$0xff]  ;;  %v578_v16 = vld [vmem:[%s2418_s11] sm:$0xff] }
  0x21   : > { %1897 = vmatprep.mubr.msk.bf16.mxu0 %vm448_vm1, %v417_v8  ;;  %v409_v17 = vld [vmem:[%s2406_s27 + $0x40] sm:$0xff]  ;;  %v410_v18 = vld [vmem:[%s2406_s27 + $0x48] sm:$0xff]  ;;  %v579_v19 = vpack.c.bf16 %v578_v16, %v578_v16  ;;  %v420_v20 = vpack.c.bf16 %v408_v15, %v407_v14  ;;  %v411_v22 = vld [vmem:[%s2406_s27 + $0x50] sm:$0xff] }
  0x22   : > { %1898 = vmatmul.mubr.msk.bf16.vlgmr.msra.gmra.mrb[0].mxu0 %vm448_vm1, %v418_v12  ;;  %v421_v21 = vpack.c.bf16 %v410_v18, %v409_v17  ;;  %v412_v23 = vld [vmem:[%s2406_s27 + $0x58] sm:$0xff]  ;;  %v413_v24 = vld [vmem:[%s2406_s27 + $0x60] sm:$0xff]  ;;  %v414_v25 = vld [vmem:[%s2406_s27 + $0x68] sm:$0xff] }
  0x23   : > { %1901 = vmatprep.mubr.msk.bf16.mxu0 %vm448_vm1, %v419_v13  ;;  %1918 = vmatmul.mubr.msk.bf16.vlgmr.msra.gmra.mrb[0].mxu1 %vm448_vm1, %v579_v19  ;;  %v422_v26 = vpack.c.bf16 %v412_v23, %v411_v22  ;;  %v423_v27 = vpack.c.bf16 %v414_v25, %v413_v24  ;;  %v415_v28 = vld [vmem:[%s2406_s27 + $0x70] sm:$0xff]  ;;  %v416_v29 = vld [vmem:[%s2406_s27 + $0x78] sm:$0xff]  ;;  %v647_v24 = vlaneseq  ;;  %v654_v25 = vld [vmem:[%s399_s28] sm:$0x1]  ;;  %s2935_s27 = sand.u32 1, %s2254_s14  }
  0x24   : > { %1957 = vmatprep.mubr.msk.bf16.mxu1 %vm2265_vm0, %v2264_v2  ;;  %v424_v30 = vpack.c.bf16 %v416_v29, %v415_v28  ;;  %s3045_s28 = sshll.u32 %s2935_s27, 3 }
  0x25   : > { %v2504_v28 = vand.u32 127, %v647_v24 }
  0x2a   : > { %1902 = vmatmul.mubr.msk.bf16.gmra.mrb[4].mxu0 %vm448_vm1, %v420_v20  ;;  %v1786_v20 = vld [vmem:[%s3038_s4] ss:$0 sm:$0xff] }
  0x2b   : > { %1905 = vmatprep.mubr.msk.bf16.mxu0 %vm448_vm1, %v421_v21 }
  0x32   : > { %1906 = vmatmul.mubr.msk.bf16.gmra.mrb[8].mxu0 %vm448_vm1, %v422_v26  ;;  %v650_v26 = vshrl.u32 %v647_v24, 7 }
  0x33   : > { %1909 = vmatprep.mubr.msk.bf16.mxu0 %vm448_vm1, %v423_v27  ;;  %v655_v27 = vunpack.c.0.s8 %v654_v25 }
  0x34   : > { %v2506_v29 = vadd.s32 8, %v650_v26 }
  0x35   : > { %vm2508_vm3 = vcmp.ne.s32.totalorder %v655_v27, 0 }
  0x36   : > { %vm653_vm4 = vcmp.ne.s32.totalorder %v2504_v28, %v2506_v29 }
  0x37   : > { %vm744_vm5 = vmand %vm2508_vm3, %vm653_vm4 }
  0x3a   : > { %1910 = vmatmul.mubr.msk.bf16.gmra.mrb[12].mxu0 %vm448_vm1, %v424_v30 }
  0x3b   : > { %1937 = vmatprep.mubr.msk.bf16.mxu0 %vm2265_vm0, %v2264_v2 }
  0xf5   : > { %v1899_v31 = vpop.f32.mrb[0].mxu0 }
  0xf6   : > { %v507_v33 = vpop.f32.mrb[1].mxu0  ;;  %v516_v35 = vadd.f32 %v1899_v31, %v1775_v32  ;;  %v640_v40 = vpop.f32.mrb[0].mxu1  ;;  %v2516_v31 = vsub.s32 1, %v650_v26 }
  0xf7   : > { %v1900_v34 = vpop.f32.mrb[2].mxu0  ;;  %v508_v38 = vadd.f32 %v1775_v32, %v507_v33  ;;  %v1919_v42 = vpop.f32.mrb[1].mxu1  ;;  %v641_v21 = vadd.f32 %v1786_v20, %v640_v40 }
  0xf8   : > { %v519_v36 = vadd.f32 %v1900_v34, %v1775_v32  ;;  %v510_v37 = vpop.f32.mrb[3].mxu0  ;;  %v643_v44 = vpop.f32.mrb[2].mxu1  ;;  %v2521_v34 = vsub.s32 2, %v650_v26 }
  0xf9   : > { %v511_v39 = vadd.f32 %v1775_v32, %v510_v37  ;;  %v1920_v45 = vpop.f32.mrb[3].mxu1  ;;  %v2494_v23 = vpack.c.bf16 %v641_v21, %v641_v21 }
  0xfa   : > { %v2449_v41 = vpack.c.bf16 %v519_v36, %v516_v35  ;;  %v2523_v35 = vsub.s32 3, %v650_v26 }
  0xfb   : > { %v2451_v43 = vpack.c.bf16 %v511_v39, %v508_v38 }
  0xfc   : > { %829 = vrot.lane.b32.xlu1 %v2449_v41, %s2266_s20  ;;  %v666_v57 = vsel %vm658_vm2, %v2449_v41, 0 }
  0xfd   : > { %v663_v46 = vsel %vm658_vm2, %v2451_v43, 0  ;;  %v1903_v47 = vpop.f32.mrb[4].mxu0 }
  0xfe   : > { %1922 = vmatpush3.bf16.xpose.msra.mxu0 %v663_v46  ;;  %v532_v48 = vadd.f32 %v1903_v47, %v1775_v32  ;;  %v523_v49 = vpop.f32.mrb[5].mxu0  ;;  %v762_v46 = vsub.s32 0, %v650_v26 }
  0xff   : > { %v524_v50 = vadd.f32 %v1775_v32, %v523_v49  ;;  %v1904_v51 = vpop.f32.mrb[6].mxu0  ;;  %1923 = vmatprep.subr.bf16.mxu0 %v2264_v2 }
 0x100   : > { %v535_v52 = vadd.f32 %v1904_v51, %v1775_v32  ;;  %v526_v53 = vpop.f32.mrb[7].mxu0 }
 0x101   : > { %v527_v54 = vadd.f32 %v1775_v32, %v526_v53 }
 0x102   : > { %v2458_v55 = vpack.c.bf16 %v535_v52, %v532_v48 }
 0x103   : > { %v2460_v56 = vpack.c.bf16 %v527_v54, %v524_v50 }
 0x104   : > { %v672_v16 = vsel %vm658_vm2, %v2458_v55, 0 }
 0x105   : > { %v1907_v58 = vpop.f32.mrb[8].mxu0  ;;  %v669_v5 = vsel %vm658_vm2, %v2460_v56, 0 }
 0x106   : > { %1924 = vmatpush3.bf16.xpose.msra.mxu0 %v666_v57  ;;  %v548_v59 = vadd.f32 %v1907_v58, %v1775_v32  ;;  %v539_v60 = vpop.f32.mrb[9].mxu0 }
 0x107   : > { %1925 = vmatprep.subr.bf16.mxu0 %v2264_v2  ;;  %v540_v61 = vadd.f32 %v1775_v32, %v539_v60  ;;  %v1908_v62 = vpop.f32.mrb[10].mxu0 }
 0x108   : > { %v551_v63 = vadd.f32 %v1908_v62, %v1775_v32  ;;  %v542_v0 = vpop.f32.mrb[11].mxu0 }
 0x109   : > { %v543_v1 = vadd.f32 %v1775_v32, %v542_v0 }
 0x10a   : > { %v2465_v3 = vpack.c.bf16 %v551_v63, %v548_v59 }
 0x10b   : > { %v2467_v4 = vpack.c.bf16 %v543_v1, %v540_v61 }
 0x10c   : > { %v678_v18 = vsel %vm658_vm2, %v2465_v3, 0 }
 0x10d   : > { %v1911_v6 = vpop.f32.mrb[12].mxu0  ;;  %v675_v17 = vsel %vm658_vm2, %v2467_v4, 0 }
 0x10e   : > { %1926 = vmatpush3.bf16.xpose.msra.mxu0 %v669_v5  ;;  %v564_v7 = vadd.f32 %v1911_v6, %v1775_v32  ;;  %v555_v8 = vpop.f32.mrb[13].mxu0 }
 0x10f   : > { %1927 = vmatprep.subr.bf16.mxu0 %v2264_v2  ;;  %v556_v9 = vadd.f32 %v1775_v32, %v555_v8  ;;  %v1912_v10 = vpop.f32.mrb[14].mxu0 }
 0x110   : > { %v567_v11 = vadd.f32 %v1912_v10, %v1775_v32  ;;  %v558_v12 = vpop.f32.mrb[15].mxu0 }
 0x111   : > { %v559_v13 = vadd.f32 %v1775_v32, %v558_v12  ;;  %v2267_v32 = vmov 0  }
 0x112   : > { %v2472_v14 = vpack.c.bf16 %v567_v11, %v564_v7  ;;  %v2519_v33 = vsel %vm744_vm5, 1, %v2267_v32  ;;  %v2532_v39 = vsel %vm653_vm4, 1, %v2267_v32  ;;  %vm794_vm4 = vcmask 1042434  }
 0x113   : > { %v2474_v15 = vpack.c.bf16 %v559_v13, %v556_v9  ;;  %v996_v36 = vrot.slane %v2519_v33, %v2516_v31  ;;  %v1213_v37 = vrot.slane %v2519_v33, %v2521_v34  ;;  %v1430_v38 = vrot.slane %v2519_v33, %v2523_v35 }
 0x114   : > { %v684_v22 = vsel %vm658_vm2, %v2472_v14, 0  ;;  %v730_v40 = vrot.slane %v2532_v39, 1  ;;  %v731_v42 = vrot.slane %v2532_v39, 2  ;;  %v732_v44 = vrot.slane %v2532_v39, 3 }
 0x115   : > { %v681_v19 = vsel %vm658_vm2, %v2474_v15, 0  ;;  %v2541_v45 = vcombine.high %v2532_v39, %v2532_v39  ;;  %v763_v50 = vrot.slane %v2519_v33, %v762_v46 }
 0x116   : > { %1928 = vmatpush3.bf16.xpose.msra.mxu0 %v672_v16  ;;  %vm737_vm6 = vcmp.ne.s32.totalorder %v730_v40, 0  ;;  %vm738_vm7 = vcmp.ne.s32.totalorder %v731_v42, 0  ;;  %vm739_vm9 = vcmp.ne.s32.totalorder %v732_v44, 0 }
 0x117   : > { %1929 = vmatprep.subr.bf16.mxu0 %v2264_v2  ;;  %vm745_vm8 = vmand %vm2508_vm3, %vm737_vm6  ;;  %v733_v48 = vrot.slane %v2541_v45, 1  ;;  %vm740_vm11 = vcmp.ne.s32.totalorder %v2541_v45, 0  ;;  %v734_v52 = vrot.slane %v2541_v45, 2  ;;  %v735_v59 = vrot.slane %v2541_v45, 3 }
 0x118   : > { %vm746_vm10 = vmand %vm2508_vm3, %vm738_vm7  ;;  %v2546_v47 = vsel %vm745_vm8, 1, %v2267_v32  ;;  %vm796_vm7 = vcmask 1043459  }
 0x119   : > { %vm747_vm12 = vmand %vm2508_vm3, %vm739_vm9  ;;  %v2553_v49 = vsel %vm746_vm10, 1, %v2267_v32  ;;  %v767_v51 = vrot.slane %v2546_v47, %v762_v46  ;;  %vm2558_vm14 = vcmp.ne.s32.totalorder %v733_v48, 0  ;;  %vm742_vm5 = vcmp.ne.s32.totalorder %v734_v52, 0 }
 0x11a   : > { %vm748_vm15 = vmand %vm2508_vm3, %vm740_vm11  ;;  %v755_v54 = vsel %vm747_vm12, 1, %v2267_v32  ;;  %v771_v57 = vrot.slane %v2553_v49, %v762_v46  ;;  %vm743_vm8 = vcmp.ne.s32.totalorder %v735_v59, 0  ;;  %vm798_vm10 = vcmask 1044484  }
 0x11b   : > { %v793_v58 = vsel %vm792_vm13, %v767_v51, %v763_v50  ;;  %vm749_vm6 = vmand %vm2508_vm3, %vm2558_vm14  ;;  %v2573_v60 = vsel %vm748_vm15, 1, %v2267_v32  ;;  %v775_v61 = vrot.slane %v755_v54, %v762_v46  ;;  %vm800_vm12 = vcmask 1045509  }
 0x11c   : > { %v795_v62 = vsel %vm794_vm4, %v771_v57, %v793_v58  ;;  %vm750_vm9 = vmand %vm2508_vm3, %vm742_vm5  ;;  %v2579_v63 = vsel %vm749_vm6, 1, %v2267_v32  ;;  %v779_v0 = vrot.slane %v2573_v60, %v762_v46  ;;  %vm802_vm14 = vcmask 1046534  }
 0x11d   : > { %v797_v1 = vsel %vm796_vm7, %v775_v61, %v795_v62  ;;  %vm751_vm11 = vmand %vm2508_vm3, %vm743_vm8  ;;  %v2586_v5 = vsel %vm750_vm9, 1, %v2267_v32  ;;  %v783_v6 = vrot.slane %v2579_v63, %v762_v46  ;;  %vm804_vm15 = vcmask 1047559  }
 0x11e   : > { %1930 = vmatpush3.bf16.xpose.msra.mxu0 %v675_v17  ;;  %v799_v7 = vsel %vm798_vm10, %v779_v0, %v797_v1  ;;  %v759_v8 = vsel %vm751_vm11, 1, %v2267_v32  ;;  %v787_v9 = vrot.slane %v2586_v5, %v762_v46  ;;  %vm652_vm5 = vcmp.gt.s32.totalorder %v2504_v28, %v2506_v29 }
 0x11f   : > { %1931 = vmatprep.subr.bf16.mxu0 %v2264_v2  ;;  %v801_v10 = vsel %vm800_vm12, %v783_v6, %v799_v7  ;;  %v791_v11 = vrot.slane %v759_v8, %v762_v46 }
 0x120   : > { %v803_v12 = vsel %vm802_vm14, %v787_v9, %v801_v10 }
 0x121   : > { %v805_v13 = vsel %vm804_vm15, %v791_v11, %v803_v12 }
 0x122   : > { %vm806_vm6 = vcmp.ne.s32.totalorder %v805_v13, 0 }
 0x123   : > { %vm807_vm8 = vmor %vm652_vm5, %vm806_vm6 }
 0x126   : > { %1932 = vmatpush3.bf16.xpose.msra.mxu0 %v678_v18 }
 0x127   : > { %1933 = vmatprep.subr.bf16.mxu0 %v2264_v2 }
 0x12e   : > { %1934 = vmatpush3.bf16.xpose.msra.mxu0 %v681_v19 }
 0x12f   : > { %1935 = vmatprep.subr.bf16.mxu0 %v2264_v2 }
 0x136   : > { %1936 = vmatpush3.bf16.xpose.msra.mxu0 %v684_v22 }
 0x137   : > { %1981 = vmatprep.subr.bf16.mxu0 %v2264_v2 }
 0x13d   : > { %1938 = vmatmul.mubr.msk.bf16.vlgmr.msra.gmra.mrb[16].mxu0 %vm658_vm2, %v2494_v23 }
 0x13e   : > { %1997 = vmatprep.mubr.msk.bf16.mxu0 %vm2265_vm0, %v2264_v2 }
 0x16e   : > { %v830_v26 = vpop.permute.xlu1 %829 }
 0x210   : > { %v720_v16 = vpop.f32.mrb[16].mxu0 }
 0x211   : > { %v1939_v17 = vpop.f32.mrb[17].mxu0  ;;  %v808_v18 = vsel %vm807_vm8, -1e+30, %v720_v16 }
 0x212   : > { %809 = vmax.xlane.f32.xlu0 %v808_v18  ;;  %v723_v19 = vpop.f32.mrb[18].mxu0 }
 0x213   : > { %v1940_v20 = vpop.f32.mrb[19].mxu0 }
 0x214   : > { %v981_v20 = vrot.slane %v2532_v39, 7 }
 0x216   : > { %vm983_vm9 = vcmp.ne.s32.totalorder %v981_v20, 0 }
 0x217   : > { %vm985_vm11 = vmand %vm2508_vm3, %vm983_vm9 }
 0x228   : > { %827 = vrot.lane.b32.xlu0 %v2451_v43, %s2266_s20 }
 0x22c   : > { %831 = vrot.lane.b32.xlu0 %v2460_v56, %s2266_s20 }
 0x230   : > { %833 = vrot.lane.b32.xlu0 %v2458_v55, %s2266_s20 }
 0x234   : > { %835 = vrot.lane.b32.xlu0 %v2467_v4, %s2266_s20 }
 0x238   : > { %837 = vrot.lane.b32.xlu0 %v2465_v3, %s2266_s20 }
 0x23c   : > { %841 = vrot.lane.b32.xlu0 %v2472_v14, %s2266_s20 }
 0x240   : > { %898 = vrot.lane.b32.xlu0 %v2451_v43, %s2268_s29 }
 0x244   : > { %900 = vrot.lane.b32.xlu0 %v2449_v41, %s2268_s29 }
 0x248   : > { %902 = vrot.lane.b32.xlu0 %v2460_v56, %s2268_s29 }
 0x24c   : > { %906 = vrot.lane.b32.xlu0 %v2467_v4, %s2268_s29 }
 0x250   : > { %910 = vrot.lane.b32.xlu0 %v2474_v15, %s2268_s29 }
 0x254   : > { %896 = vrot.lane.b32.xlu0 %v2494_v23, %s2268_s29 }
 0x258   : > { %1041 = vrot.lane.b32.xlu0 %v2451_v43, %s2269_s30 }
 0x25c   : > { %1043 = vrot.lane.b32.xlu0 %v2449_v41, %s2269_s30 }
 0x260   : > { %1047 = vrot.lane.b32.xlu0 %v2458_v55, %s2269_s30 }
 0x29f   : > { %v810_v21 = vpop.xlane.xlu0 %809 }
 0x2a0   : > { %v811_v22 = vsub.f32 %v808_v18, %v810_v21  ;;  %v982_v21 = vrot.slane %v2541_v45, 7 }
 0x2a2   : > { %v812_v24 = vmul.f32 1.442695, %v811_v22  ;;  %v2678_v22 = vsel %vm985_vm11, 1, %v2267_v32  ;;  %vm984_vm6 = vcmp.ne.s32.totalorder %v982_v21, 0 }
 0x2a3   : > { %v828_v25 = vpop.permute.xlu0 %827  ;;  %vm986_vm8 = vmand %vm2508_vm3, %vm984_vm6 }
 0x2a4   : > { %2152 = vpow2.f32 %v812_v24  ;;  %1942 = vmatpush3.bf16.msra.mxu1 %v828_v25  ;;  %v992_v24 = vrot.slane %v2678_v22, %v2516_v31  ;;  %v1000_v25 = vrot.slane %v2546_v47, %v2516_v31 }
 0x2a5   : > { %1943 = vmatprep.subr.bf16.mxu1 %v2264_v2 }
 0x2a7   : > { %v832_v27 = vpop.permute.xlu0 %831 }
 0x2a8   : > { %1944 = vmatpush3.bf16.msra.mxu1 %v830_v26  ;;  %v2687_v26 = vsel %vm986_vm8, 1, %v2267_v32 }
 0x2a9   : > { %1945 = vmatprep.subr.bf16.mxu1 %v2264_v2 }
 0x2ab   : > { %v834_v40 = vpop.permute.xlu0 %833 }
 0x2ac   : > { %1946 = vmatpush3.bf16.msra.mxu1 %v832_v27  ;;  %v1004_v27 = vrot.slane %v2553_v49, %v2516_v31 }
 0x2ad   : > { %1947 = vmatprep.subr.bf16.mxu1 %v2264_v2 }
 0x2ae   : > { %v2153_v42 = vpop.eup %2152 }
 0x2af   : > { %814 = vadd.xlane.f32.xlu1 %v2153_v42  ;;  %v836_v44 = vpop.permute.xlu0 %835 }
 0x2b0   : > { %1948 = vmatpush3.bf16.msra.mxu1 %v834_v40  ;;  %v1021_v40 = vsel %vm792_vm13, %v996_v36, %v992_v24 }
 0x2b1   : > { %1949 = vmatprep.subr.bf16.mxu1 %v2264_v2 }
 0x2b3   : > { %v838_v46 = vpop.permute.xlu0 %837 }
 0x2b4   : > { %1950 = vmatpush3.bf16.msra.mxu1 %v836_v44  ;;  %v1022_v44 = vsel %vm794_vm4, %v1000_v25, %v1021_v40 }
 0x2b5   : > { %1951 = vmatprep.subr.bf16.mxu1 %v2264_v2 }
 0x2b7   : > { %v842_v48 = vpop.permute.xlu0 %841 }
 0x2b8   : > { %1952 = vmatpush3.bf16.msra.mxu1 %v838_v46  ;;  %v1012_v46 = vrot.slane %v2573_v60, %v2516_v31 }
 0x2b9   : > { %1953 = vmatprep.subr.bf16.mxu1 %v2264_v2 }
 0x2bb   : > { %v899_v50 = vpop.permute.xlu0 %898 }
 0x2bc   : > { %v918_v7 = vsel %vm658_vm2, %v899_v50, 0  ;;  %v1016_v50 = vrot.slane %v2579_v63, %v2516_v31 }
 0x2bf   : > { %v901_v51 = vpop.permute.xlu0 %900 }
 0x2c0   : > { %839 = vrot.lane.b32.xlu1 %v2474_v15, %s2266_s20  ;;  %v921_v8 = vsel %vm658_vm2, %v901_v51, 0  ;;  %v1020_v51 = vrot.slane %v2586_v5, %v2516_v31  ;;  %s2272_s20 = smov 104  }
 0x2c3   : > { %v903_v52 = vpop.permute.xlu0 %902 }
 0x2c4   : > { %904 = vrot.lane.b32.xlu1 %v2458_v55, %s2268_s29  ;;  %v924_v9 = vsel %vm658_vm2, %v903_v52, 0 }
 0x2c7   : > { %v907_v53 = vpop.permute.xlu0 %906 }
 0x2c8   : > { %908 = vrot.lane.b32.xlu1 %v2465_v3, %s2268_s29  ;;  %v930_v12 = vsel %vm658_vm2, %v907_v53, 0 }
 0x2cb   : > { %v911_v54 = vpop.permute.xlu0 %910 }
 0x2cc   : > { %912 = vrot.lane.b32.xlu1 %v2472_v14, %s2268_s29  ;;  %v936_v17 = vsel %vm658_vm2, %v911_v54, 0  ;;  %s387_s29 = scalar_lea.vmem [#allocation4], %s3045_s28  ;;  %s2277_s28 = smov [#allocation4]  }
 0x2cd   : > { %s2172_s0 = sshll.u32 %s2277_s28, 4  ;;  %s2173_s0 = int_to_ptr.vmem [resolvable:$false] %s2172_s0 }
 0x2ce   : > { %s2174_s1 = scalar_lea.vmem %s2173_s0, 256 }
 0x2cf   : > { %v897_v57 = vpop.permute.xlu0 %896 }
 0x2d3   : > { %v1042_v58 = vpop.permute.xlu0 %1041 }
 0x2d4   : > { %1982 = vmatpush3.bf16.msra.mxu0 %v1042_v58 }
 0x2d5   : > { %1983 = vmatprep.subr.bf16.mxu0 %v2264_v2 }
 0x2d7   : > { %v1044_v59 = vpop.permute.xlu0 %1043 }
 0x2d8   : > { %1984 = vmatpush3.bf16.msra.mxu0 %v1044_v59 }
 0x2d9   : > { %1985 = vmatprep.subr.bf16.mxu0 %v2264_v2 }
 0x33c   : > { %v815_v61 = vpop.xlane.xlu1 %814 }
 0x33d   : > { %2154 = vrcp.f32 %v815_v61 }
 0x340   : > { %v840_v62 = vpop.permute.xlu1 %839 }
 0x341   : > { %1954 = vmatpush3.bf16.msra.mxu1 %v840_v62 }
 0x342   : > { %1955 = vmatprep.subr.bf16.mxu1 %v2264_v2 }
 0x344   : > { %v905_v10 = vpop.permute.xlu1 %904 }
 0x345   : > { %1956 = vmatpush3.bf16.msra.mxu1 %v842_v48  ;;  %v927_v11 = vsel %vm658_vm2, %v905_v10, 0  ;;  %v1023_v48 = vsel %vm796_vm7, %v1004_v27, %v1022_v44  ;;  %v1048_v10 = vpop.permute.xlu0 %1047 }
 0x346   : > { %1961 = vmatprep.subr.bf16.mxu1 %v2264_v2 }
 0x347   : > { %v2155_v0 = vpop.eup %2154 }
 0x348   : > { %v2648_v1 = vmul.f32 %v2155_v0, %v2153_v42  ;;  %v909_v13 = vpop.permute.xlu1 %908  ;;  %v1008_v42 = vrot.slane %v2687_v26, %v2516_v31 }
 0x349   : > { %v933_v16 = vsel %vm658_vm2, %v909_v13, 0 }
 0x34a   : > { %v818_v6 = vpack.c.bf16 %v2648_v1, %v2648_v1  ;;  %v1024_v49 = vsel %vm798_vm10, %v1008_v42, %v1023_v48  ;;  %v892_v42 = vmul.f32 0.25, %v2648_v1 }
 0x34b   : > { %v1025_v36 = vsel %vm800_vm12, %v1012_v46, %v1024_v49 }
 0x34c   : > { %1958 = vmatmul.mubr.bf16.vlgmr.msra.gmra.mrb[4].mxu1 %v818_v6  ;;  %v913_v18 = vpop.permute.xlu1 %912  ;;  %v1026_v52 = vsel %vm802_vm14, %v1016_v50, %v1025_v36 }
 0x34d   : > { %1977 = vmatprep.mubr.msk.bf16.mxu1 %vm2265_vm0, %v2264_v2  ;;  %v939_v19 = vsel %vm658_vm2, %v913_v18, 0  ;;  %v1027_v53 = vsel %vm804_vm15, %v1020_v51, %v1026_v52 }
 0x34e   : > { %1962 = vmatpush3.bf16.xpose.msra.mxu1 %v918_v7  ;;  %vm1028_vm9 = vcmp.ne.s32.totalorder %v1027_v53, 0 }
 0x34f   : > { %1963 = vmatprep.subr.bf16.mxu1 %v2264_v2  ;;  %vm1029_vm11 = vmor %vm652_vm5, %vm1028_vm9 }
 0x356   : > { %1964 = vmatpush3.bf16.xpose.msra.mxu1 %v921_v8 }
 0x357   : > { %1965 = vmatprep.subr.bf16.mxu1 %v2264_v2 }
 0x35e   : > { %1966 = vmatpush3.bf16.xpose.msra.mxu1 %v924_v9 }
 0x35f   : > { %1967 = vmatprep.subr.bf16.mxu1 %v2264_v2 }
 0x366   : > { %1968 = vmatpush3.bf16.xpose.msra.mxu1 %v927_v11 }
 0x367   : > { %1969 = vmatprep.subr.bf16.mxu1 %v2264_v2 }
 0x36e   : > { %1970 = vmatpush3.bf16.xpose.msra.mxu1 %v930_v12 }
 0x36f   : > { %1971 = vmatprep.subr.bf16.mxu1 %v2264_v2 }
 0x376   : > { %1972 = vmatpush3.bf16.xpose.msra.mxu1 %v933_v16 }
 0x377   : > { %1973 = vmatprep.subr.bf16.mxu1 %v2264_v2 }
 0x37e   : > { %1974 = vmatpush3.bf16.xpose.msra.mxu1 %v936_v17 }
 0x37f   : > { %1975 = vmatprep.subr.bf16.mxu1 %v2264_v2 }
 0x386   : > { %1976 = vmatpush3.bf16.xpose.msra.mxu1 %v939_v19 }
 0x387   : > { %2021 = vmatprep.subr.bf16.mxu1 %v2264_v2 }
 0x38d   : > { %1978 = vmatmul.mubr.msk.bf16.vlgmr.msra.gmra.mrb[8].mxu1 %vm658_vm2, %v897_v57 }
 0x38e   : > { %2037 = vmatprep.mubr.msk.bf16.mxu1 %vm2265_vm0, %v2264_v2 }
 0x41f   : > { %v2709_v54 = vpop.f32.mrb[4].mxu1 }
 0x420   : > { %v1959_v57 = vpop.f32.mrb[5].mxu1 }
 0x421   : > { %v888_v58 = vpop.f32.mrb[6].mxu1 }
 0x422   : > { %v1960_v59 = vpop.f32.mrb[7].mxu1 }
 0x460   : > { %v975_v61 = vpop.f32.mrb[8].mxu1 }
 0x461   : > { %v1979_v62 = vpop.f32.mrb[9].mxu1  ;;  %v1030_v0 = vsel %vm1029_vm11, -1e+30, %v975_v61 }
 0x462   : > { %1031 = vmax.xlane.f32.xlu1 %v1030_v0  ;;  %v978_v31 = vpop.f32.mrb[10].mxu1 }
 0x463   : > { %v1980_v5 = vpop.f32.mrb[11].mxu1 }
 0x464   : > { %v1194_v5 = vrot.slane %v2532_v39, 6 }
 0x466   : > { %vm1196_vm6 = vcmp.ne.s32.totalorder %v1194_v5, 0 }
 0x467   : > { %vm1198_vm8 = vmand %vm2508_vm3, %vm1196_vm6 }
 0x473   : > { %1045 = vrot.lane.b32.xlu1 %v2460_v56, %s2269_s30 }
 0x477   : > { %1049 = vrot.lane.b32.xlu1 %v2467_v4, %s2269_s30 }
 0x47b   : > { %1051 = vrot.lane.b32.xlu1 %v2465_v3, %s2269_s30 }
 0x47f   : > { %1053 = vrot.lane.b32.xlu1 %v2474_v15, %s2269_s30 }
 0x483   : > { %1111 = vrot.lane.b32.xlu1 %v2451_v43, %s2270_s12 }
 0x487   : > { %1115 = vrot.lane.b32.xlu1 %v2460_v56, %s2270_s12 }
 0x48b   : > { %1119 = vrot.lane.b32.xlu1 %v2467_v4, %s2270_s12 }
 0x48f   : > { %1123 = vrot.lane.b32.xlu1 %v2474_v15, %s2270_s12 }
 0x493   : > { %1109 = vrot.lane.b32.xlu1 %v2494_v23, %s2270_s12 }
 0x497   : > { %1254 = vrot.lane.b32.xlu1 %v2451_v43, %s2271_s18 }
 0x49b   : > { %1256 = vrot.lane.b32.xlu1 %v2449_v41, %s2271_s18 }
 0x49f   : > { %1260 = vrot.lane.b32.xlu1 %v2458_v55, %s2271_s18 }
 0x4a3   : > { %1268 = vrot.lane.b32.xlu1 %v2472_v14, %s2271_s18 }
 0x4ef   : > { %v1032_v6 = vpop.xlane.xlu1 %1031 }
 0x4f0   : > { %v1033_v7 = vsub.f32 %v1030_v0, %v1032_v6  ;;  %v1195_v6 = vrot.slane %v2541_v45, 6 }
 0x4f2   : > { %v1034_v8 = vmul.f32 1.442695, %v1033_v7  ;;  %v2787_v7 = vsel %vm1198_vm8, 1, %v2267_v32  ;;  %vm1197_vm9 = vcmp.ne.s32.totalorder %v1195_v6, 0 }
 0x4f3   : > { %v1046_v9 = vpop.permute.xlu1 %1045  ;;  %vm1199_vm11 = vmand %vm2508_vm3, %vm1197_vm9 }
 0x4f4   : > { %2156 = vpow2.f32 %v1034_v8  ;;  %1986 = vmatpush3.bf16.msra.mxu0 %v1046_v9  ;;  %v1205_v8 = vrot.slane %v2787_v7, %v2521_v34  ;;  %v1209_v9 = vrot.slane %v2678_v22, %v2521_v34 }
 0x4f5   : > { %1987 = vmatprep.subr.bf16.mxu0 %v2264_v2 }
 0x4f7   : > { %v1050_v11 = vpop.permute.xlu1 %1049 }
 0x4f8   : > { %1988 = vmatpush3.bf16.msra.mxu0 %v1048_v10  ;;  %v2796_v10 = vsel %vm1199_vm11, 1, %v2267_v32 }
 0x4f9   : > { %1989 = vmatprep.subr.bf16.mxu0 %v2264_v2 }
 0x4fb   : > { %v1052_v12 = vpop.permute.xlu1 %1051 }
 0x4fc   : > { %1990 = vmatpush3.bf16.msra.mxu0 %v1050_v11  ;;  %v1217_v11 = vrot.slane %v2546_v47, %v2521_v34 }
 0x4fd   : > { %1991 = vmatprep.subr.bf16.mxu0 %v2264_v2 }
 0x4fe   : > { %v2157_v13 = vpop.eup %2156 }
 0x4ff   : > { %1036 = vadd.xlane.f32.xlu0 %v2157_v13  ;;  %v1054_v16 = vpop.permute.xlu1 %1053 }
 0x500   : > { %1992 = vmatpush3.bf16.msra.mxu0 %v1052_v12  ;;  %v1234_v12 = vsel %vm792_vm13, %v1209_v9, %v1205_v8 }
 0x501   : > { %1993 = vmatprep.subr.bf16.mxu0 %v2264_v2 }
 0x503   : > { %v1112_v17 = vpop.permute.xlu1 %1111 }
 0x504   : > { %1994 = vmatpush3.bf16.msra.mxu0 %v1054_v16  ;;  %v1131_v49 = vsel %vm658_vm2, %v1112_v17, 0  ;;  %v1235_v16 = vsel %vm794_vm4, %v1213_v37, %v1234_v12  ;;  %v1225_v17 = vrot.slane %v2687_v26, %v2521_v34 }
 0x505   : > { %1995 = vmatprep.subr.bf16.mxu0 %v2264_v2 }
 0x507   : > { %v1116_v18 = vpop.permute.xlu1 %1115 }
 0x508   : > { %v1137_v1 = vsel %vm658_vm2, %v1116_v18, 0  ;;  %v1236_v18 = vsel %vm796_vm7, %v1217_v11, %v1235_v16 }
 0x50b   : > { %v1120_v19 = vpop.permute.xlu1 %1119 }
 0x50c   : > { %v1143_v58 = vsel %vm658_vm2, %v1120_v19, 0  ;;  %v1229_v19 = vrot.slane %v2573_v60, %v2521_v34 }
 0x50f   : > { %v1124_v20 = vpop.permute.xlu1 %1123 }
 0x510   : > { %v1149_v62 = vsel %vm658_vm2, %v1124_v20, 0  ;;  %v1233_v20 = vrot.slane %v2579_v63, %v2521_v34 }
 0x513   : > { %v1110_v21 = vpop.permute.xlu1 %1109 }
 0x515   : > { %1055 = vrot.lane.b32.xlu0 %v2472_v14, %s2269_s30 }
 0x517   : > { %v1255_v24 = vpop.permute.xlu1 %1254 }
 0x518   : > { %2022 = vmatpush3.bf16.msra.mxu1 %v1255_v24 }
 0x519   : > { %1113 = vrot.lane.b32.xlu0 %v2449_v41, %s2270_s12  ;;  %2023 = vmatprep.subr.bf16.mxu1 %v2264_v2 }
 0x51b   : > { %v1257_v25 = vpop.permute.xlu1 %1256 }
 0x51c   : > { %2024 = vmatpush3.bf16.msra.mxu1 %v1257_v25 }
 0x51d   : > { %1117 = vrot.lane.b32.xlu0 %v2458_v55, %s2270_s12  ;;  %2025 = vmatprep.subr.bf16.mxu1 %v2264_v2 }
 0x521   : > { %1121 = vrot.lane.b32.xlu0 %v2465_v3, %s2270_s12 }
 0x525   : > { %1125 = vrot.lane.b32.xlu0 %v2472_v14, %s2270_s12 }
 0x58c   : > { %v1037_v27 = vpop.xlane.xlu0 %1036 }
 0x58d   : > { %2158 = vrcp.f32 %v1037_v27 }
 0x590   : > { %v1056_v40 = vpop.permute.xlu0 %1055 }
 0x591   : > { %1996 = vmatpush3.bf16.msra.mxu0 %v1056_v40 }
 0x592   : > { %2001 = vmatprep.subr.bf16.mxu0 %v2264_v2 }
 0x594   : > { %v1114_v36 = vpop.permute.xlu0 %1113 }
 0x595   : > { %v1134_v52 = vsel %vm658_vm2, %v1114_v36, 0 }
 0x597   : > { %v2159_v44 = vpop.eup %2158 }
 0x598   : > { %v1039_v46 = vmul.f32 %v2159_v44, %v2157_v13  ;;  %v1118_v53 = vpop.permute.xlu0 %1117  ;;  %v1221_v13 = vrot.slane %v2796_v10, %v2521_v34 }
 0x599   : > { %v1140_v57 = vsel %vm658_vm2, %v1118_v53, 0 }
 0x59a   : > { %v1040_v48 = vpack.c.bf16 %v1039_v46, %v1039_v46  ;;  %v1106_v50 = vmul.f32 0.25, %v1039_v46  ;;  %v1237_v47 = vsel %vm798_vm10, %v1221_v13, %v1236_v18 }
 0x59c   : > { %1998 = vmatmul.mubr.bf16.vlgmr.msra.gmra.mrb[20].mxu0 %v1040_v48  ;;  %v2760_v51 = vadd.f32 %v1106_v50, %v892_v42  ;;  %v1122_v59 = vpop.permute.xlu0 %1121 }
 0x59d   : > { %2002 = vmatpush3.bf16.xpose.msra.mxu0 %v1131_v49  ;;  %2017 = vmatprep.mubr.msk.bf16.mxu0 %vm2265_vm0, %v2264_v2  ;;  %v1146_v61 = vsel %vm658_vm2, %v1122_v59, 0 }
 0x59e   : > { %2003 = vmatprep.subr.bf16.mxu0 %v2264_v2 }
 0x5a0   : > { %v1126_v0 = vpop.permute.xlu0 %1125 }
 0x5a1   : > { %v1152_v31 = vsel %vm658_vm2, %v1126_v0, 0 }
 0x5a5   : > { %2004 = vmatpush3.bf16.xpose.msra.mxu0 %v1134_v52 }
 0x5a6   : > { %2005 = vmatprep.subr.bf16.mxu0 %v2264_v2 }
 0x5ad   : > { %2006 = vmatpush3.bf16.xpose.msra.mxu0 %v1137_v1  ;;  %v1261_v1 = vpop.permute.xlu1 %1260 }
 0x5ae   : > { %2007 = vmatprep.subr.bf16.mxu0 %v2264_v2 }
 0x5b1   : > { %v1269_v59 = vpop.permute.xlu1 %1268 }
 0x5b5   : > { %2008 = vmatpush3.bf16.xpose.msra.mxu0 %v1140_v57 }
 0x5b6   : > { %2009 = vmatprep.subr.bf16.mxu0 %v2264_v2 }
 0x5bd   : > { %2010 = vmatpush3.bf16.xpose.msra.mxu0 %v1143_v58 }
 0x5be   : > { %2011 = vmatprep.subr.bf16.mxu0 %v2264_v2 }
 0x5c5   : > { %2012 = vmatpush3.bf16.xpose.msra.mxu0 %v1146_v61 }
 0x5c6   : > { %2013 = vmatprep.subr.bf16.mxu0 %v2264_v2 }
 0x5cd   : > { %2014 = vmatpush3.bf16.xpose.msra.mxu0 %v1149_v62 }
 0x5ce   : > { %2015 = vmatprep.subr.bf16.mxu0 %v2264_v2 }
 0x5d5   : > { %2016 = vmatpush3.bf16.xpose.msra.mxu0 %v1152_v31 }
 0x5d6   : > { %2061 = vmatprep.subr.bf16.mxu0 %v2264_v2 }
 0x5dc   : > { %2018 = vmatmul.mubr.msk.bf16.vlgmr.msra.gmra.mrb[24].mxu0 %vm658_vm2, %v1110_v21  ;;  %v1238_v21 = vsel %vm800_vm12, %v1225_v17, %v1237_v47 }
 0x5dd   : > { %2077 = vmatprep.mubr.msk.bf16.mxu0 %vm2265_vm0, %v2264_v2  ;;  %v1239_v24 = vsel %vm802_vm14, %v1229_v19, %v1238_v21 }
 0x5de   : > { %v1240_v25 = vsel %vm804_vm15, %v1233_v20, %v1239_v24 }
 0x5df   : > { %vm1241_vm6 = vcmp.ne.s32.totalorder %v1240_v25, 0 }
 0x5e0   : > { %vm1242_vm8 = vmor %vm652_vm5, %vm1241_vm6 }
 0x66f   : > { %v2818_v37 = vpop.f32.mrb[20].mxu0 }
 0x670   : > { %v1999_v27 = vpop.f32.mrb[21].mxu0 }
 0x671   : > { %v1102_v40 = vpop.f32.mrb[22].mxu0 }
 0x672   : > { %v2000_v42 = vpop.f32.mrb[23].mxu0  ;;  %v1407_v40 = vrot.slane %v2532_v39, 5  ;;  %v1426_v39 = vrot.slane %v2678_v22, %v2523_v35 }
 0x673   : > { %v1408_v42 = vrot.slane %v2541_v45, 5 }
 0x674   : > { %vm1409_vm9 = vcmp.ne.s32.totalorder %v1407_v40, 0 }
 0x675   : > { %vm1411_vm11 = vmand %vm2508_vm3, %vm1409_vm9  ;;  %vm1410_vm6 = vcmp.ne.s32.totalorder %v1408_v42, 0 }
 0x6af   : > { %v1188_v44 = vpop.f32.mrb[24].mxu0 }
 0x6b0   : > { %v2019_v46 = vpop.f32.mrb[25].mxu0  ;;  %v1243_v48 = vsel %vm1242_vm8, -1e+30, %v1188_v44  ;;  %v1413_v44 = vsel %vm1411_vm11, 1, %v2267_v32  ;;  %vm1412_vm8 = vmand %vm2508_vm3, %vm1410_vm6 }
 0x6b1   : > { %1244 = vmax.xlane.f32.xlu0 %v1243_v48  ;;  %v1191_v34 = vpop.f32.mrb[26].mxu0  ;;  %v1418_v46 = vrot.slane %v1413_v44, %v2523_v35 }
 0x6b2   : > { %v2020_v63 = vpop.f32.mrb[27].mxu0  ;;  %v1414_v34 = vsel %vm1412_vm8, 1, %v2267_v32  ;;  %v1446_v32 = vrot.slane %v2573_v60, %v2523_v35 }
 0x6b3   : > { %v1434_v63 = vrot.slane %v1414_v34, %v2523_v35 }
 0x6c7   : > { %1258 = vrot.lane.b32.xlu0 %v2460_v56, %s2271_s18 }
 0x6cb   : > { %1262 = vrot.lane.b32.xlu0 %v2467_v4, %s2271_s18 }
 0x6cf   : > { %1264 = vrot.lane.b32.xlu0 %v2465_v3, %s2271_s18 }
 0x6d3   : > { %1266 = vrot.lane.b32.xlu0 %v2474_v15, %s2271_s18  ;;  %s1654_s18 = sshll.u32 %s387_s29, 4  ;;  %s1655_s18 = int_to_ptr.vmem [resolvable:$true] %s1654_s18 }
 0x6d4   : > { %p2175_p0 = scmp.lt.s32.totalorder %s1655_s18, %s2173_s0 }
 0x6d7   : > { %1324 = vrot.lane.b32.xlu0 %v2451_v43, %s2272_s20 }
 0x6db   : > { %1328 = vrot.lane.b32.xlu0 %v2460_v56, %s2272_s20 }
 0x6df   : > { %1332 = vrot.lane.b32.xlu0 %v2467_v4, %s2272_s20 }
 0x6e3   : > { %1336 = vrot.lane.b32.xlu0 %v2474_v15, %s2272_s20 }
 0x6e7   : > { %1322 = vrot.lane.b32.xlu0 %v2494_v23, %s2272_s20 }
 0x6eb   : > { %1467 = vrot.lane.b32.xlu0 %v2451_v43, %s2273_s21 }
 0x6ef   : > { %1469 = vrot.lane.b32.xlu0 %v2449_v41, %s2273_s21 }
 0x6f3   : > { %1477 = vrot.lane.b32.xlu0 %v2465_v3, %s2273_s21 }
 0x73e   : > { %v1245_v50 = vpop.xlane.xlu0 %1244 }
 0x73f   : > { %v1246_v49 = vsub.f32 %v1243_v48, %v1245_v50  ;;  %v1422_v48 = vrot.slane %v2787_v7, %v2523_v35  ;;  %v1442_v7 = vrot.slane %v2687_v26, %v2523_v35 }
 0x741   : > { %v1247_v36 = vmul.f32 1.442695, %v1246_v49  ;;  %v1447_v45 = vsel %vm792_vm13, %v1422_v48, %v1418_v46  ;;  %v1438_v49 = vrot.slane %v2796_v10, %v2523_v35 }
 0x742   : > { %v1259_v52 = vpop.permute.xlu0 %1258  ;;  %v1448_v50 = vsel %vm794_vm4, %v1426_v39, %v1447_v45  ;;  %vm1550_vm4 = vcmask 195584  }
 0x743   : > { %2160 = vpow2.f32 %v1247_v36  ;;  %2026 = vmatpush3.bf16.msra.mxu1 %v1259_v52  ;;  %v1449_v30 = vsel %vm796_vm7, %v1430_v38, %v1448_v50 }
 0x744   : > { %2027 = vmatprep.subr.bf16.mxu1 %v2264_v2  ;;  %v1450_v22 = vsel %vm798_vm10, %v1434_v63, %v1449_v30 }
 0x745   : > { %v1451_v36 = vsel %vm800_vm12, %v1438_v49, %v1450_v22 }
 0x746   : > { %v1263_v23 = vpop.permute.xlu0 %1262  ;;  %v1452_v52 = vsel %vm802_vm14, %v1442_v7, %v1451_v36 }
 0x747   : > { %2028 = vmatpush3.bf16.msra.mxu1 %v1261_v1  ;;  %v1453_v1 = vsel %vm804_vm15, %v1446_v32, %v1452_v52 }
 0x748   : > { %2029 = vmatprep.subr.bf16.mxu1 %v2264_v2  ;;  %vm1454_vm3 = vcmp.ne.s32.totalorder %v1453_v1, 0 }
 0x749   : > { %vm1455_vm13 = vmor %vm652_vm5, %vm1454_vm3 }
 0x74a   : > { %v1265_v43 = vpop.permute.xlu0 %1264 }
 0x74b   : > { %2030 = vmatpush3.bf16.msra.mxu1 %v1263_v23 }
 0x74c   : > { %2031 = vmatprep.subr.bf16.mxu1 %v2264_v2 }
 0x74d   : > { %v2161_v53 = vpop.eup %2160 }
 0x74e   : > { %1249 = vadd.xlane.f32.xlu1 %v2161_v53  ;;  %v1267_v57 = vpop.permute.xlu0 %1266 }
 0x74f   : > { %2032 = vmatpush3.bf16.msra.mxu1 %v1265_v43 }
 0x750   : > { %2033 = vmatprep.subr.bf16.mxu1 %v2264_v2 }
 0x752   : > { %v1325_v58 = vpop.permute.xlu0 %1324 }
 0x753   : > { %2034 = vmatpush3.bf16.msra.mxu1 %v1267_v57  ;;  %v1344_v13 = vsel %vm658_vm2, %v1325_v58, 0 }
 0x754   : > { %2035 = vmatprep.subr.bf16.mxu1 %v2264_v2 }
 0x756   : > { %v1329_v61 = vpop.permute.xlu0 %1328 }
 0x757   : > { %2036 = vmatpush3.bf16.msra.mxu1 %v1269_v59  ;;  %v1350_v18 = vsel %vm658_vm2, %v1329_v61, 0 }
 0x758   : > { %2041 = vmatprep.subr.bf16.mxu1 %v2264_v2 }
 0x75a   : > { %v1333_v62 = vpop.permute.xlu0 %1332 }
 0x75b   : > { %v1356_v47 = vsel %vm658_vm2, %v1333_v62, 0 }
 0x75e   : > { %v1337_v0 = vpop.permute.xlu0 %1336 }
 0x75f   : > { %1326 = vrot.lane.b32.xlu1 %v2449_v41, %s2272_s20  ;;  %v1362_v24 = vsel %vm658_vm2, %v1337_v0, 0 }
 0x762   : > { %v1323_v31 = vpop.permute.xlu0 %1322 }
 0x763   : > { %1330 = vrot.lane.b32.xlu1 %v2458_v55, %s2272_s20 }
 0x766   : > { %v1468_v5 = vpop.permute.xlu0 %1467 }
 0x767   : > { %1334 = vrot.lane.b32.xlu1 %v2465_v3, %s2272_s20  ;;  %2062 = vmatpush3.bf16.msra.mxu0 %v1468_v5 }
 0x768   : > { %2063 = vmatprep.subr.bf16.mxu0 %v2264_v2 }
 0x76a   : > { %v1470_v6 = vpop.permute.xlu0 %1469 }
 0x76b   : > { %1338 = vrot.lane.b32.xlu1 %v2472_v14, %s2272_s20  ;;  %2064 = vmatpush3.bf16.msra.mxu0 %v1470_v6  ;;  %v2150_v6 = vld [vmem:[%s3041_s7] sm:$0xff]   ;;  %s1628_s20 = scalar_lea.sflag [#allocation5], %s2935_s27 }
 0x76c   : > { %2065 = vmatprep.subr.bf16.mxu0 %v2264_v2 }
 0x7db   : > { %v1250_v8 = vpop.xlane.xlu1 %1249 }
 0x7dc   : > { %2162 = vrcp.f32 %v1250_v8  ;;  %v2151_v8 = vld [vmem:[%s3041_s7 + $0x8] sm:$0xff]  }
 0x7df   : > { %v1327_v16 = vpop.permute.xlu1 %1326 }
 0x7e0   : > { %v1347_v17 = vsel %vm658_vm2, %v1327_v16, 0 }
 0x7e3   : > { %v1331_v19 = vpop.permute.xlu1 %1330 }
 0x7e6   : > { %v2163_v41 = vpop.eup %2162 }
 0x7e7   : > { %v1252_v9 = vmul.f32 %v2163_v41, %v2161_v53  ;;  %v1335_v20 = vpop.permute.xlu1 %1334 }
 0x7e8   : > { %v1359_v21 = vsel %vm658_vm2, %v1335_v20, 0 }
 0x7e9   : > { %v1253_v11 = vpack.c.bf16 %v1252_v9, %v1252_v9  ;;  %v1319_v12 = vmul.f32 0.25, %v1252_v9 }
 0x7eb   : > { %2038 = vmatmul.mubr.bf16.vlgmr.msra.gmra.mrb[12].mxu1 %v1253_v11  ;;  %v2865_v3 = vadd.f32 %v1319_v12, %v2760_v51  ;;  %v1353_v51 = vsel %vm658_vm2, %v1331_v19, 0  ;;  %v1339_v25 = vpop.permute.xlu1 %1338 }
 0x7ec   : > { %2042 = vmatpush3.bf16.xpose.msra.mxu1 %v1344_v13  ;;  %2057 = vmatprep.mubr.msk.bf16.mxu1 %vm2265_vm0, %v2264_v2  ;;  %v1365_v27 = vsel %vm658_vm2, %v1339_v25, 0 }
 0x7ed   : > { %2043 = vmatprep.subr.bf16.mxu1 %v2264_v2 }
 0x7f4   : > { %2044 = vmatpush3.bf16.xpose.msra.mxu1 %v1347_v17 }
 0x7f5   : > { %2045 = vmatprep.subr.bf16.mxu1 %v2264_v2 }
 0x7fc   : > { %2046 = vmatpush3.bf16.xpose.msra.mxu1 %v1350_v18 }
 0x7fd   : > { %2047 = vmatprep.subr.bf16.mxu1 %v2264_v2 }
 0x804   : > { %2048 = vmatpush3.bf16.xpose.msra.mxu1 %v1353_v51 }
 0x805   : > { %2049 = vmatprep.subr.bf16.mxu1 %v2264_v2 }
 0x80c   : > { %2050 = vmatpush3.bf16.xpose.msra.mxu1 %v1356_v47 }
 0x80d   : > { %2051 = vmatprep.subr.bf16.mxu1 %v2264_v2 }
 0x814   : > { %2052 = vmatpush3.bf16.xpose.msra.mxu1 %v1359_v21 }
 0x815   : > { %2053 = vmatprep.subr.bf16.mxu1 %v2264_v2 }
 0x81c   : > { %2054 = vmatpush3.bf16.xpose.msra.mxu1 %v1362_v24 }
 0x81d   : > { %2055 = vmatprep.subr.bf16.mxu1 %v2264_v2 }
 0x824   : > { %2056 = vmatpush3.bf16.xpose.msra.mxu1 %v1365_v27 }
 0x82b   : > { %2058 = vmatmul.mubr.msk.bf16.vlgmr.msra.gmra.mrb[16].mxu1 %vm658_vm2, %v1323_v31 }
 0x8be   : > { %v1312_v10 = vpop.f32.mrb[12].mxu1 }
 0x8bf   : > { %v2039_v23 = vpop.f32.mrb[13].mxu1 }
 0x8c0   : > { %v1315_v43 = vpop.f32.mrb[14].mxu1 }
 0x8c1   : > { %v2040_v33 = vpop.f32.mrb[15].mxu1 }
 0x8fe   : > { %v1401_v38 = vpop.f32.mrb[16].mxu1 }
 0x8ff   : > { %v2059_v26 = vpop.f32.mrb[17].mxu1  ;;  %v1456_v53 = vsel %vm1455_vm13, -1e+30, %v1401_v38 }
 0x900   : > { %1457 = vmax.xlane.f32.xlu1 %v1456_v53  ;;  %v1404_v35 = vpop.f32.mrb[18].mxu1 }
 0x901   : > { %v2060_v60 = vpop.f32.mrb[19].mxu1 }
 0x911   : > { %1471 = vrot.lane.b32.xlu1 %v2460_v56, %s2273_s21 }
 0x915   : > { %1473 = vrot.lane.b32.xlu1 %v2458_v55, %s2273_s21 }
 0x919   : > { %1475 = vrot.lane.b32.xlu1 %v2467_v4, %s2273_s21 }
 0x91d   : > { %1479 = vrot.lane.b32.xlu1 %v2474_v15, %s2273_s21  ;;  %v1478_v15 = vpop.permute.xlu0 %1477 }
 0x921   : > { %1536 = vrot.lane.b32.xlu1 %v2818_v37, %s2274_s25  ;;  %s3046_s25 = sshll.u32 %s2355_s17, 7 }
 0x922   : > { %s2959_s12 = scalar_lea.hbm %s3044_s10, %s3046_s25 }
 0x98d   : > { %v1458_v28 = vpop.xlane.xlu1 %1457 }
 0x98e   : > { %v1459_v29 = vsub.f32 %v1456_v53, %v1458_v28 }
 0x990   : > { %v1460_v57 = vmul.f32 1.442695, %v1459_v29 }
 0x991   : > { %v1472_v58 = vpop.permute.xlu1 %1471 }
 0x992   : > { %2164 = vpow2.f32 %v1460_v57  ;;  %2066 = vmatpush3.bf16.msra.mxu0 %v1472_v58 }
 0x993   : > { %2067 = vmatprep.subr.bf16.mxu0 %v2264_v2 }
 0x995   : > { %v1474_v56 = vpop.permute.xlu1 %1473 }
 0x996   : > { %2068 = vmatpush3.bf16.msra.mxu0 %v1474_v56 }
 0x997   : > { %2069 = vmatprep.subr.bf16.mxu0 %v2264_v2 }
 0x999   : > { %v1476_v55 = vpop.permute.xlu1 %1475 }
 0x99a   : > { %2070 = vmatpush3.bf16.msra.mxu0 %v1476_v55 }
 0x99b   : > { %2071 = vmatprep.subr.bf16.mxu0 %v2264_v2 }
 0x99c   : > { %v2165_v4 = vpop.eup %2164 }
 0x99d   : > { %1462 = vadd.xlane.f32.xlu0 %v2165_v4  ;;  %v1480_v37 = vpop.permute.xlu1 %1479 }
 0x99e   : > { %2072 = vmatpush3.bf16.msra.mxu0 %v1478_v15 }
 0x99f   : > { %2073 = vmatprep.subr.bf16.mxu0 %v2264_v2 }
 0x9a1   : > { %v1537_v13 = vpop.permute.xlu1 %1536 }
 0x9a2   : > { %2074 = vmatpush3.bf16.msra.mxu0 %v1480_v37  ;;  %v1547_v16 = vsel %vm658_vm2, %v2709_v54, %v1537_v13 }
 0x9a3   : > { %2075 = vmatprep.subr.bf16.mxu0 %v2264_v2 }
 0x9b3   : > { %1481 = vrot.lane.b32.xlu0 %v2472_v14, %s2273_s21  ;;  %s2276_s21 = smov 24  }
 0x9b7   : > { %1540 = vrot.lane.b32.xlu0 %v1312_v10, %s2275_s26 }
 0xa2a   : > { %v1463_v59 = vpop.xlane.xlu0 %1462 }
 0xa2b   : > { %2166 = vrcp.f32 %v1463_v59 }
 0xa2e   : > { %v1482_v61 = vpop.permute.xlu0 %1481 }
 0xa2f   : > { %2076 = vmatpush3.bf16.msra.mxu0 %v1482_v61 }
 0xa30   : > { %2081 = vmatprep.subr.bf16.mxu0 %v2264_v2 }
 0xa35   : > { %v2167_v62 = vpop.eup %2166 }
 0xa36   : > { %v1465_v0 = vmul.f32 %v2167_v62, %v2165_v4 }
 0xa38   : > { %v1466_v31 = vpack.c.bf16 %v1465_v0, %v1465_v0  ;;  %v1532_v5 = vmul.f32 0.25, %v1465_v0 }
 0xa3a   : > { %2078 = vmatmul.mubr.bf16.vlgmr.msra.gmra.mrb[28].mxu0 %v1466_v31  ;;  %v1533_v14 = vadd.f32 %v1532_v5, %v2865_v3  ;;  %v1541_v3 = vpop.permute.xlu0 %1540 }
 0xa3b   : > { %2085 = vmatprep.mubr.msk.bf16.mxu0 %vm2265_vm0, %v2264_v2  ;;  %2082 = vmatpush3.bf16.msra.mxu0 %v2150_v6  ;;  %vm1548_vm0 = vcmask 130048  }
 0xa3c   : > { %1534 = vst [vmem:[%s387_s29] sm:$0xff] %v1533_v14  ;;  %2083 = vmatprep.subr.bf16.mxu0 %v2264_v2  ;;  %v1549_v17 = vsel %vm1548_vm0, %v1547_v16, %v1541_v3 }
 0xa3f   : > { %2084 = vmatpush3.bf16.msra.mxu0 %v2151_v8 }
 0xb0d   : > { %v1525_v41 = vpop.f32.mrb[28].mxu0 }
 0xb0e   : > { %1544 = vrot.lane.b32.xlu1 %v1525_v41, %s2276_s21  ;;  %v2079_v9 = vpop.f32.mrb[29].mxu0  ;;  %s2168_s21 = scalar_lea.vmem %s1655_s18, 128 }
 0xb0f   : > { %v1528_v11 = vpop.f32.mrb[30].mxu0  ;;  %p2169_p11 = scmp.ne.s32.totalorder %s1655_s18, %s2168_s21  ;;  %p2176_p1 = scmp.lt.s32.totalorder %s2174_s1, %s2168_s21 }
 0xb10   : > { %v2080_v12 = vpop.f32.mrb[31].mxu0 }
 0xb11   : > { %p2170_p12 = pnand %p2169_p11, %p2372_p5  ;;  %p2177_p2 = por %p2176_p1, %p2175_p0 }
 0xb13   : > { %p2171_p13 = pneg %p2170_p12 }
 0xb15   : > { %p2178_p3 = pnand %p2177_p2, %p2171_p13 }
 0xb80   : > { %v1545_v2 = vpop.permute.xlu1 %1544 }
 0xb81   : > { %v1551_v18 = vsel %vm1550_vm4, %v1549_v17, %v1545_v2 }
 0xb82   : > { %v1552_v19 = vpack.c.bf16 %v1551_v18, %v1551_v18 }
 0xb84   : > { %2086 = vmatmul.mubr.msk.bf16.vlgmr.msra.gmra.mrb[32].mxu0 %vm448_vm1, %v1552_v19 }
 0xb85   : > { %2181 = shalt.err (!%p2178_p3)
}
 0xb86   : > { %s2182_s29 = scalar_lea.hbm %s2959_s12, 128  ;;  %s2186_s28 = scalar_lea.hbm %s3044_s10, 256 }
 0xb87   : > { %p2183_p4 = scmp.ne.s32.totalorder %s2959_s12, %s2182_s29  ;;  %p2187_p9 = scmp.lt.u32.totalorder %s2959_s12, %s3044_s10 }
 0xb88   : > { %p2188_p10 = scmp.lt.u32.totalorder %s2186_s28, %s2182_s29  ;;  %p2190_p12 = scmp.lt.u32.totalorder %s2182_s29, %s2959_s12 }
 0xb89   : > { %p2184_p7 = pnand %p2183_p4, %p2372_p5 }
 0xb8a   : > { %p2189_p11 = por %p2188_p10, %p2187_p9 }
 0xb8b   : > { %p2185_p8 = pneg %p2184_p7 }
 0xb8c   : > { %p2191_p13 = por %p2190_p12, %p2189_p11 }
 0xb8e   : > { %p2192_p0 = pnand %p2191_p13, %p2185_p8 }
 0xb90   : > { %2195 = shalt.err (!%p2192_p0)
}
 0xb91   : > { %2090 = dma.vmem_to_hbm [thread:$0]  (%p2372_p5), %s1655_s18, 128, %s2959_s12, %s1628_s20   ;;  %v1794_v54 = vld [vmem:[%s3042_s8] ss:$0 sm:$0xff] }
 0xb92   : > { %v1619_v47 = vld [vmem:[%s2418_s11] sm:$0xff]  ;;  %s3057_s25 = sshll.u32 %s2935_s27, 3  ;;  %s3058_s30 = sshll.u32 %s2355_s17, 7 }
 0xb93   : > { %s380_s29 = scalar_lea.vmem [#allocation2], %s3057_s25  ;;  %s2990_s12 = scalar_lea.hbm %s3043_s9, %s3058_s30 }
 0xb94   : > { %s1641_s26 = sshll.u32 %s380_s29, 4  ;;  %s1623_s11 = scalar_lea.sflag [#allocation3], %s2935_s27  ;;  %s2992_s26 = int_to_ptr.vmem [resolvable:$true] %s1641_s26 }
 0xb95   : > { %s2196_s18 = scalar_lea.vmem %s2992_s26, 128  ;;  %s2278_s20 = smov [#allocation2]  }
 0xb96   : > { %p2197_p1 = scmp.ne.s32.totalorder %s2992_s26, %s2196_s18  ;;  %s2200_s17 = sshll.u32 %s2278_s20, 4  ;;  %s2201_s17 = int_to_ptr.vmem [resolvable:$false] %s2200_s17 }
 0xb97   : > { %s2202_s1 = scalar_lea.vmem %s2201_s17, 256  ;;  %p2203_p4 = scmp.lt.s32.totalorder %s2992_s26, %s2201_s17 }
 0xb98   : > { %p2198_p2 = pnand %p2197_p1, %p2372_p5  ;;  %p2204_p7 = scmp.lt.s32.totalorder %s2202_s1, %s2196_s18 }
 0xb9a   : > { %p2199_p3 = pneg %p2198_p2  ;;  %p2205_p8 = por %p2204_p7, %p2203_p4 }
 0xb9c   : > { %p2206_p9 = pnand %p2205_p8, %p2199_p3 }
 0xc57   : > { %v1613_v51 = vpop.f32.mrb[32].mxu0 }
 0xc58   : > { %v1614_v20 = vadd.f32 %v1794_v54, %v1613_v51  ;;  %v2087_v21 = vpop.f32.mrb[33].mxu0 }
 0xc59   : > { %v1616_v24 = vpop.f32.mrb[34].mxu0 }
 0xc5a   : > { %v1620_v25 = vadd.f32 %v1619_v47, %v1614_v20  ;;  %v2088_v27 = vpop.f32.mrb[35].mxu0 }
 0xc5c   : > { %1621 = vst.msk [vmem:[%s380_s29] sm:$0xff] %vm448_vm1, %v1620_v25 }
 0xc5d   : > { %2209 = shalt.err (!%p2206_p9)
}
 0xc5e   : > { %s2210_s27 = scalar_lea.hbm %s2990_s12, 128  ;;  %s2214_s29 = scalar_lea.hbm %s3043_s9, 256 }
 0xc5f   : > { %p2211_p10 = scmp.ne.s32.totalorder %s2990_s12, %s2210_s27  ;;  %p2215_p13 = scmp.lt.u32.totalorder %s2990_s12, %s3043_s9 }
 0xc60   : > { %p2216_p0 = scmp.lt.u32.totalorder %s2214_s29, %s2210_s27  ;;  %p2218_p2 = scmp.lt.u32.totalorder %s2210_s27, %s2990_s12 }
 0xc61   : > { %p2212_p11 = pnand %p2211_p10, %p2372_p5 }
 0xc62   : > { %p2217_p1 = por %p2216_p0, %p2215_p13 }
 0xc63   : > { %p2213_p12 = pneg %p2212_p11 }
 0xc64   : > { %p2219_p3 = por %p2218_p2, %p2217_p1 }
 0xc66   : > { %p2220_p4 = pnand %p2219_p3, %p2213_p12 }
 0xc68   : > { %2223 = shalt.err (!%p2220_p4)
}
 0xc69   : > { %2089 = dma.vmem_to_hbm [thread:$0]  (%p2372_p5), %s2992_s26, 128, %s2990_s12, %s1623_s11  }
 0xc6a PF: > { %p2100_p7 = scmp.ge.s32.totalorder %s2262_s16, 2  ;;  %s1666_s0 = sand.u32 1, %s2250_s13  }
 0xc6b   : > { %s1667_s18 = scalar_lea.sflag [#allocation3], %s1666_s0 }
 0xc6c   : > { %p2094_p8 = pnand %p2100_p7, %p2376_p6 }
 0xc6e   : > { %2241 = dma.done.wait (!%p2094_p8), %s1667_s18, 128  }
 0xc6f   : > { %2243 = vsyncadd (!%p2094_p8), %s1667_s18, 4294967168  ;;  %s1676_s20 = scalar_lea.sflag [#allocation5], %s1666_s0 }
 0xc70   : > { %2245 = dma.done.wait (!%p2094_p8), %s1676_s20, 128  }
 0xc71   : > { %2247 = vsyncadd (!%p2094_p8), %s1676_s20, 4294967168  ;;  %p24_p5 = scmp.ge.s32.totalorder %s2359_s19, 4   ;;  %s3059_s13 = smov %s2254_s14 }
 0xc72   : > { %s3060_s14 = smov %s2258_s15  ;;  %s3061_s15 = smov %s2370_s22 }
 0xc73   : > { %s3062_s16 = smov %s2359_s19  ;;  %26 = sbr.rel (!%p24_p5) target bundleno = 8 (0x8), region = 114 }
 0xc7a   :  { %1681 = vsyncpa [#allocation3], 1 }
 0xc7b   :  { %1683 = vsyncpa [#allocation3 + $0x1], 1 }
 0xc7c   :  { %1684 = vsyncpa [#allocation5], 1 }
 0xc7d   :  { %1686 = vsyncpa [#allocation5 + $0x1], 1 }

</bundles_post_ra>
